<compile_context>
chip_gen: v7x
topology: tpu7x:2x2x1
jax: 0.10.0
libtpu: 0.0.40
codegen_flags: <defaults>
</compile_context>

<pallas_src>
import math
import functools

import jax
import jax.numpy as jnp
from jax.experimental import pallas as pl
from jax.experimental.pallas import tpu as pltpu


# --------------------------- chip / tiling config ---------------------------

def _chip_config():
    """Per-generation VMEM budget and tile targets."""
    vmem_bytes = 64 * 1024 * 1024          # conservative default (v7x-safe)
    try:
        info = pltpu.get_tpu_info()
        vmem_bytes = int(getattr(info, "vmem_capacity_bytes", vmem_bytes))
    except Exception:
        pass
    if vmem_bytes > 96 * 1024 * 1024:      # v5e / v6e: 128 MiB physical VMEM
        return {"vmem": 96 * 1024 * 1024, "tm": 1024, "tn": 1024, "tk": 1024}
    # v7x (64 MiB per TensorCore) or unknown -> conservative budget & tiles
    return {"vmem": 44 * 1024 * 1024, "tm": 512, "tn": 512, "tk": 512}


_CFG = _chip_config()
_LANE_MULTS = (256, 128)                   # prefer 256-aligned K/N (v6e/v7x MXU)


def _round_up(x, m):
    return ((x + m - 1) // m) * m


def _sublane_mults(dtype):
    return (16, 8) if dtype == jnp.bfloat16 else (8,)


def _choose_tile(dim, target, mults):
    """Return (tile, padded_dim) with tile | padded_dim and tile <= target.

    Unlike the old _pick_tile, this never falls back to an oversized full-dim
    tile: if no clean divisor exists the dim is zero-padded up to a multiple
    of the tile (correct for matmuls: padded K/N columns contribute zeros)."""
    if dim <= target:
        return dim, dim
    for mult in mults:
        if target < mult:
            continue
        t = (target // mult) * mult
        while t >= mult:
            if dim % t == 0:
                return t, dim
            t -= mult
    mult = mults[-1]
    t = max((target // mult) * mult, mult)
    return t, _round_up(dim, t)


def _pad_axis(a, axis, size):
    if a.shape[axis] == size:
        return a
    pad = [(0, 0)] * a.ndim
    pad[axis] = (0, size - a.shape[axis])
    return jnp.pad(a, pad)


# ----------------------------- Pallas kernels -------------------------------

def _matmul_kernel(x_ref, w_ref, b_ref, o_ref, acc_ref):
    """Tiled o = x @ w + b, f32 accumulation over the K grid axis.
    x: (tm, tk) bf16, w: (tk, tn) bf16 [pre-transposed], b: (1, tn)."""
    k = pl.program_id(2)

    @pl.when(k == 0)
    def _():
        acc_ref[...] = jnp.zeros_like(acc_ref)

    acc_ref[...] += jnp.dot(x_ref[...], w_ref[...],
                            preferred_element_type=jnp.float32)

    @pl.when(k == pl.num_programs(2) - 1)
    def _():
        o_ref[...] = (acc_ref[...]
                      + b_ref[...].astype(jnp.float32)).astype(o_ref.dtype)


def _linear_ln_kernel(x_ref, w_ref, b_ref, r_ref, g_ref, bt_ref, o_ref,
                      acc_ref):
    """o = LayerNorm(r + x @ w + b) fused into the matmul epilogue.
    Grid = (M tiles, K tiles); LN (f32 stats) over the full output dim E."""
    k = pl.program_id(1)

    @pl.when(k == 0)
    def _():
        acc_ref[...] = jnp.zeros_like(acc_ref)

    acc_ref[...] += jnp.dot(x_ref[...], w_ref[...],
                            preferred_element_type=jnp.float32)

    @pl.when(k == pl.num_programs(1) - 1)
    def _():
        y = (acc_ref[...] + b_ref[...].astype(jnp.float32)
             + r_ref[...].astype(jnp.float32))
        mu = jnp.mean(y, axis=-1, keepdims=True)
        var = jnp.mean(jnp.square(y - mu), axis=-1, keepdims=True)
        o_ref[...] = ((y - mu) * jax.lax.rsqrt(var + 1e-5)
                      * g_ref[...].astype(jnp.float32)
                      + bt_ref[...].astype(jnp.float32)).astype(o_ref.dtype)


def _ffn_ln_kernel(x_ref, w1_ref, b1_ref, w2_ref, b2_ref, r_ref, g_ref,
                   bt_ref, o_ref, acc_ref):
    """o = LayerNorm(r + relu(x @ w1 + b1) @ w2 + b2).
    Grid = (M tiles, F tiles): w1/w2 are streamed along the hidden dim F, so
    neither weight slab needs to be fully resident (v7x VMEM fit)."""
    f = pl.program_id(1)

    @pl.when(f == 0)
    def _():
        acc_ref[...] = jnp.zeros_like(acc_ref)

    h = jnp.dot(x_ref[...], w1_ref[...], preferred_element_type=jnp.float32)
    h = jnp.maximum(h + b1_ref[...].astype(jnp.float32), 0.0)
    acc_ref[...] += jnp.dot(h.astype(x_ref.dtype), w2_ref[...],
                            preferred_element_type=jnp.float32)

    @pl.when(f == pl.num_programs(1) - 1)
    def _():
        y = (acc_ref[...] + b2_ref[...].astype(jnp.float32)
             + r_ref[...].astype(jnp.float32))
        mu = jnp.mean(y, axis=-1, keepdims=True)
        var = jnp.mean(jnp.square(y - mu), axis=-1, keepdims=True)
        o_ref[...] = ((y - mu) * jax.lax.rsqrt(var + 1e-5)
                      * g_ref[...].astype(jnp.float32)
                      + bt_ref[...].astype(jnp.float32)).astype(o_ref.dtype)


def _attn_kernel(q_ref, k_ref, v_ref, o_ref, *, causal):
    """One (batch, head) program: softmax(Q K^T [+causal]) @ V.
    q_ref: (1,1,L,Dh), k_ref/v_ref: (1,1,S,Dh).  Scale is pre-folded into the
    Q projection weights; softmax stats kept in f32; causal mask built
    in-kernel with iota (no HBM mask array)."""
    q = q_ref[0, 0]                                   # (L, Dh) bf16
    k = k_ref[0, 0]                                   # (S, Dh) bf16
    v = v_ref[0, 0]                                   # (S, Dh) bf16
    s = jax.lax.dot_general(q, k, (((1,), (1,)), ((), ())),
                            preferred_element_type=jnp.float32)  # (L, S) f32
    if causal:
        L, S = s.shape
        row = jax.lax.broadcasted_iota(jnp.int32, (L, S), 0)
        col = jax.lax.broadcasted_iota(jnp.int32, (L, S), 1)
        s = jnp.where(col <= row, s, -1e30)
    m = jnp.max(s, axis=-1, keepdims=True)
    p = jnp.exp(s - m)
    denom = jnp.sum(p, axis=-1, keepdims=True)
    p = p * pl.reciprocal(denom, approx=True)         # EUP slot
    o_ref[0, 0] = jnp.dot(p.astype(v.dtype), v,
                          preferred_element_type=jnp.float32).astype(o_ref.dtype)


# ----------------------------- Pallas wrappers ------------------------------

def pallas_linear(x, w, b, *, out_dtype=None):
    """x:(M,K) @ w:(K,N) [pre-transposed] + b:(N,) -> (M,N). Pads oversized /
    non-divisible dims with zeros and slices the result back."""
    M, K = x.shape
    N = w.shape[1]
    out_dtype = out_dtype or x.dtype
    tm, Mp = _choose_tile(M, _CFG["tm"], _sublane_mults(x.dtype))
    tk, Kp = _choose_tile(K, _CFG["tk"], _LANE_MULTS)
    tn, Np = _choose_tile(N, _CFG["tn"], _LANE_MULTS)
    xp = _pad_axis(_pad_axis(x, 0, Mp), 1, Kp)
    wp = _pad_axis(_pad_axis(w, 0, Kp), 1, Np)
    bp = _pad_axis(b.reshape(1, N), 1, Np)
    grid = (Mp // tm, Np // tn, Kp // tk)
    out = pl.pallas_call(
        _matmul_kernel,
        out_shape=jax.ShapeDtypeStruct((Mp, Np), out_dtype),
        grid_spec=pltpu.PrefetchScalarGridSpec(
            num_scalar_prefetch=0,
            grid=grid,
            in_specs=[
                pl.BlockSpec((tm, tk), lambda i, j, k: (i, k)),
                pl.BlockSpec((tk, tn), lambda i, j, k: (k, j)),
                pl.BlockSpec((1, tn), lambda i, j, k: (0, j)),
            ],
            out_specs=pl.BlockSpec((tm, tn), lambda i, j, k: (i, j)),
            scratch_shapes=[pltpu.VMEM((tm, tn), jnp.float32)]),
        compiler_params=pltpu.CompilerParams(
            dimension_semantics=("parallel", "parallel", "arbitrary"),
            vmem_limit_bytes=_CFG["vmem"]),
    )(xp, wp, bp)
    if (Mp, Np) != (M, N):
        out = out[:M, :N]
    return out


def pallas_linear_ln(x, w, b, res, gamma, beta):
    """LayerNorm(res + x @ w + b); LN is over the full output dim E, so E is
    never padded (mean/var stay exact)."""
    M, K = x.shape
    E = w.shape[1]
    tm, Mp = _choose_tile(M, _CFG["tm"], _sublane_mults(x.dtype))
    tk, Kp = _choose_tile(K, _CFG["tk"], _LANE_MULTS)
    xp = _pad_axis(_pad_axis(x, 0, Mp), 1, Kp)
    wp = _pad_axis(w, 0, Kp)
    rp = _pad_axis(res, 0, Mp)
    grid = (Mp // tm, Kp // tk)
    out = pl.pallas_call(
        _linear_ln_kernel,
        out_shape=jax.ShapeDtypeStruct((Mp, E), x.dtype),
        grid_spec=pltpu.PrefetchScalarGridSpec(
            num_scalar_prefetch=0,
            grid=grid,
            in_specs=[
                pl.BlockSpec((tm, tk), lambda i, k: (i, k)),
                pl.BlockSpec((tk, E), lambda i, k: (k, 0)),
                pl.BlockSpec((1, E), lambda i, k: (0, 0)),
                pl.BlockSpec((tm, E), lambda i, k: (i, 0)),
                pl.BlockSpec((1, E), lambda i, k: (0, 0)),
                pl.BlockSpec((1, E), lambda i, k: (0, 0)),
            ],
            out_specs=pl.BlockSpec((tm, E), lambda i, k: (i, 0)),
            scratch_shapes=[pltpu.VMEM((tm, E), jnp.float32)]),
        compiler_params=pltpu.CompilerParams(
            dimension_semantics=("parallel", "arbitrary"),
            vmem_limit_bytes=_CFG["vmem"]),
    )(xp, wp, b.reshape(1, E), rp, gamma.reshape(1, E), beta.reshape(1, E))
    return out[:M] if Mp != M else out


def pallas_ffn_ln(x, w1, b1, w2, b2, res, gamma, beta):
    """LayerNorm(res + relu(x @ w1 + b1) @ w2 + b2), hidden dim streamed."""
    M, E = x.shape
    F = w1.shape[1]
    tm, Mp = _choose_tile(M, _CFG["tm"], _sublane_mults(x.dtype))
    tf, Fp = _choose_tile(F, _CFG["tk"], _LANE_MULTS)
    xp = _pad_axis(x, 0, Mp)
    rp = _pad_axis(res, 0, Mp)
    w1p = _pad_axis(w1, 1, Fp)
    b1p = _pad_axis(b1.reshape(1, F), 1, Fp)
    w2p = _pad_axis(w2, 0, Fp)
    grid = (Mp // tm, Fp // tf)
    out = pl.pallas_call(
        _ffn_ln_kernel,
        out_shape=jax.ShapeDtypeStruct((Mp, E), x.dtype),
        grid_spec=pltpu.PrefetchScalarGridSpec(
            num_scalar_prefetch=0,
            grid=grid,
            in_specs=[
                pl.BlockSpec((tm, E), lambda i, f: (i, 0)),
                pl.BlockSpec((E, tf), lambda i, f: (0, f)),
                pl.BlockSpec((1, tf), lambda i, f: (0, f)),
                pl.BlockSpec((tf, E), lambda i, f: (f, 0)),
                pl.BlockSpec((1, E), lambda i, f: (0, 0)),
                pl.BlockSpec((tm, E), lambda i, f: (i, 0)),
                pl.BlockSpec((1, E), lambda i, f: (0, 0)),
                pl.BlockSpec((1, E), lambda i, f: (0, 0)),
            ],
            out_specs=pl.BlockSpec((tm, E), lambda i, f: (i, 0)),
            scratch_shapes=[pltpu.VMEM((tm, E), jnp.float32)]),
        compiler_params=pltpu.CompilerParams(
            dimension_semantics=("parallel", "arbitrary"),
            vmem_limit_bytes=_CFG["vmem"]),
    )(xp, w1p, b1p, w2p, b2.reshape(1, E), rp,
      gamma.reshape(1, E), beta.reshape(1, E))
    return out[:M] if Mp != M else out


def pallas_attention(q, k, v, *, num_heads, causal):
    """q: (N, L, E), k/v: (N, S, E) -> (N, L, E). Heads live on a grid axis
    (feeds both v7x TensorCores even at small batch); per-head blocks are
    tile-aligned views of a (N, H, L, Dh) layout."""
    Nb, L, E = q.shape
    S = k.shape[1]
    Dh = E // num_heads
    q4 = q.reshape(Nb, L, num_heads, Dh).transpose(0, 2, 1, 3)
    k4 = k.reshape(Nb, S, num_heads, Dh).transpose(0, 2, 1, 3)
    v4 = v.reshape(Nb, S, num_heads, Dh).transpose(0, 2, 1, 3)
    out = pl.pallas_call(
        functools.partial(_attn_kernel, causal=causal),
        out_shape=jax.ShapeDtypeStruct((Nb, num_heads, L, Dh), q.dtype),
        grid=(Nb, num_heads),
        in_specs=[
            pl.BlockSpec((1, 1, L, Dh), lambda b, h: (b, h, 0, 0)),
            pl.BlockSpec((1, 1, S, Dh), lambda b, h: (b, h, 0, 0)),
            pl.BlockSpec((1, 1, S, Dh), lambda b, h: (b, h, 0, 0)),
        ],
        out_specs=pl.BlockSpec((1, 1, L, Dh), lambda b, h: (b, h, 0, 0)),
        compiler_params=pltpu.CompilerParams(
            dimension_semantics=("parallel", "parallel"),
            vmem_limit_bytes=_CFG["vmem"]),
    )(q4, k4, v4)
    return out.transpose(0, 2, 1, 3).reshape(Nb, L, E)


# ----------------------------- Model pieces ---------------------------------

def decoder_layer(x2d, mem2d, p, num_heads, Nb, S, E):
    """Post-norm nn.TransformerDecoderLayer (ReLU FFN, dropout=identity)."""
    # --- self-attention (fused QKV projection, causal mask in-kernel) ---
    qkv = pallas_linear(x2d, p["sa_qkv_w"], p["sa_qkv_b"])        # (M, 3E)
    q = qkv[:, :E].reshape(Nb, S, E)
    k = qkv[:, E:2 * E].reshape(Nb, S, E)
    v = qkv[:, 2 * E:].reshape(Nb, S, E)
    sa = pallas_attention(q, k, v, num_heads=num_heads, causal=True)
    x2d = pallas_linear_ln(sa.reshape(Nb * S, E), p["sa_out_w"],
                           p["sa_out_b"], x2d, p["ln1_g"], p["ln1_b"])

    # --- cross-attention (memory = embedded input, no mask) ---
    qc = pallas_linear(x2d, p["ca_q_w"], p["ca_q_b"]).reshape(Nb, S, E)
    kv = pallas_linear(mem2d, p["ca_kv_w"], p["ca_kv_b"])         # (M, 2E)
    kc = kv[:, :E].reshape(Nb, S, E)
    vc = kv[:, E:].reshape(Nb, S, E)
    ca = pallas_attention(qc, kc, vc, num_heads=num_heads, causal=False)
    x2d = pallas_linear_ln(ca.reshape(Nb * S, E), p["ca_out_w"],
                           p["ca_out_b"], x2d, p["ln2_g"], p["ln2_b"])

    # --- feed-forward (fused Linear->ReLU->Linear->+res->LN) ---
    x2d = pallas_ffn_ln(x2d, p["w1"], p["b1"], p["w2"], p["b2"],
                        x2d, p["ln3_g"], p["ln3_b"])
    return x2d


def gpt2_forward(tokens, params, num_heads):
    Nb, S = tokens.shape
    E = params["wte"].shape[1]
    positions = jnp.arange(S)
    # embedding gather stays an XLA op; dropout -> identity (eval mode)
    emb = params["wte"][tokens] + params["wpe"][positions][None, :, :]
    x2d = emb.reshape(Nb * S, E)        # batch-first, flattened rows
    mem2d = x2d                         # transformer_decoder(out, out)
    for lp in params["layers"]:
        x2d = decoder_layer(x2d, mem2d, lp, num_heads, Nb, S, E)
    logits = pallas_linear(x2d, params["fc_w"], params["fc_b"],
                           out_dtype=jnp.float32)
    return logits.reshape(Nb, S, -1)


# ----------------------------- Param init -----------------------------------

def init_params(key, vocab_size, embed_size, num_layers, forward_expansion,
                max_length, num_heads, dtype=jnp.bfloat16):
    """Weights stored pre-transposed (in_features, out_features), bf16;
    1/sqrt(head_dim) folded into the Q projection columns."""
    E = embed_size
    F = forward_expansion * E
    q_scale = 1.0 / math.sqrt(E // num_heads)

    def nrm32(k, shape, scale=0.02):
        return scale * jax.random.normal(k, shape, jnp.float32)

    keys = jax.random.split(key, 3 + num_layers)
    params = {
        "wte": nrm32(keys[0], (vocab_size, E)).astype(dtype),
        "wpe": nrm32(keys[1], (max_length, E)).astype(dtype),
        "fc_w": nrm32(keys[2], (E, vocab_size)).astype(dtype),
        "fc_b": jnp.zeros((vocab_size,), dtype),
        "layers": [],
    }
    for li in range(num_layers):
        lk = jax.random.split(keys[3 + li], 6)
        sa_qkv_w = nrm32(lk[0], (E, 3 * E)).at[:, :E].multiply(q_scale)
        sa_qkv_b = jnp.zeros((3 * E,), jnp.float32).at[:E].multiply(q_scale)
        ca_q_w = nrm32(lk[2], (E, E)) * q_scale
        params["layers"].append({
            "sa_qkv_w": sa_qkv_w.astype(dtype),          # fused q|k|v
            "sa_qkv_b": sa_qkv_b.astype(dtype),
            "sa_out_w": nrm32(lk[1], (E, E)).astype(dtype),
            "sa_out_b": jnp.zeros((E,), dtype),
            "ca_q_w": ca_q_w.astype(dtype),
            "ca_q_b": jnp.zeros((E,), dtype),
            "ca_kv_w": nrm32(lk[3], (E, 2 * E)).astype(dtype),   # fused k|v
            "ca_kv_b": jnp.zeros((2 * E,), dtype),
            "ca_out_w": nrm32(lk[4], (E, E)).astype(dtype),
            "ca_out_b": jnp.zeros((E,), dtype),
            "w1": nrm32(lk[5], (E, F)).astype(dtype),
            "b1": jnp.zeros((F,), dtype),
            "w2": nrm32(jax.random.fold_in(lk[5], 1), (F, E)).astype(dtype),
            "b2": jnp.zeros((E,), dtype),
            "ln1_g": jnp.ones((E,), dtype),
            "ln1_b": jnp.zeros((E,), dtype),
            "ln2_g": jnp.ones((E,), dtype),
            "ln2_b": jnp.zeros((E,), dtype),
            "ln3_g": jnp.ones((E,), dtype),
            "ln3_b": jnp.zeros((E,), dtype),
        })
    return params


# ----------------------------- Main ------------------------------------------

if __name__ == "__main__":
    vocab_size = 50
    embed_size = 32
    num_layers = 2
    num_heads = 4
    forward_expansion = 4
    dropout = 0.1            # identity in the eval-mode forward
    max_length = 16
    batch, seq = 2, 8

    key = jax.random.PRNGKey(0)
    pkey, tkey = jax.random.split(key)
    params = init_params(pkey, vocab_size, embed_size, num_layers,
                         forward_expansion, max_length, num_heads)

    tokens = jax.random.randint(tkey, (batch, seq), 0, vocab_size,
                                dtype=jnp.int32)

    fwd = jax.jit(functools.partial(gpt2_forward, num_heads=num_heads))
    logits = fwd(tokens, params)
    jax.block_until_ready(logits)

    assert logits.shape == (batch, seq, vocab_size)
    assert bool(jnp.all(jnp.isfinite(logits)))
    print("KERNEL_OK")
</pallas_src>

<mosaic_0001>
module attributes {stable_mosaic.version = 11 : i64} {
  func.func @_matmul_kernel(%arg0: i32, %arg1: i32, %arg2: i32, %arg3: memref<16x32xbf16, #tpu.memory_space<vmem>>, %arg4: memref<32x32xbf16, #tpu.memory_space<vmem>>, %arg5: memref<1x32xbf16, #tpu.memory_space<vmem>>, %arg6: memref<16x32xbf16, #tpu.memory_space<vmem>>, %arg7: memref<16x32xf32, #tpu.memory_space<vmem>>) attributes {dimension_semantics = [#tpu.dimension_semantics<parallel>, #tpu.dimension_semantics<parallel>, #tpu.dimension_semantics<arbitrary>], iteration_bounds = array<i64: 1, 1, 1>, scalar_prefetch = 0 : i64, scratch_operands = 1 : i64, tpu.core_type = #tpu.core_type<tc>, window_params = [{transform_indices = @transform_0, window_bounds = array<i64: 16, 32>}, {transform_indices = @transform_1, window_bounds = array<i64: 32, 32>}, {transform_indices = @transform_2, window_bounds = array<i64: 1, 32>}, {transform_indices = @transform_3, window_bounds = array<i64: 16, 32>}]} {
    %c0_i32 = arith.constant 0 : i32
    %0 = arith.cmpi eq, %arg2, %c0_i32 : i32
    %1 = arith.extui %0 : i1 to i32
    %c0_i32_0 = arith.constant 0 : i32
    %2 = arith.cmpi ne, %1, %c0_i32_0 : i32
    scf.if %2 {
      %cst_10 = arith.constant 0.000000e+00 : f32
      %12 = vector.broadcast %cst_10 : f32 to vector<16x32xf32>
      %c0_11 = arith.constant 0 : index
      %c0_12 = arith.constant 0 : index
      %13 = vector.load %arg7[%c0_11, %c0_12] : memref<16x32xf32, #tpu.memory_space<vmem>>, vector<16x32xf32>
      tpu.vector_store %arg7[%c0_11, %c0_12], %12 {strides = array<i32>} : memref<16x32xf32, #tpu.memory_space<vmem>>, vector<16x32xf32>,
    } else {
    }
    %c0 = arith.constant 0 : index
    %c0_1 = arith.constant 0 : index
    %3 = vector.load %arg7[%c0, %c0_1] : memref<16x32xf32, #tpu.memory_space<vmem>>, vector<16x32xf32>
    %c0_2 = arith.constant 0 : index
    %c0_3 = arith.constant 0 : index
    %4 = vector.load %arg3[%c0_2, %c0_3] : memref<16x32xbf16, #tpu.memory_space<vmem>>, vector<16x32xbf16>
    %c0_4 = arith.constant 0 : index
    %c0_5 = arith.constant 0 : index
    %5 = vector.load %arg4[%c0_4, %c0_5] : memref<32x32xbf16, #tpu.memory_space<vmem>>, vector<32x32xbf16>
    %cst = arith.constant dense<0.000000e+00> : vector<16x32xf32>
    %6 = tpu.matmul %4, %5, %cst {dimension_numbers = #tpu.dot_dimension_numbers<[1], [0], [0], [1], [0, 0, 1, 1], [], []>} : vector<16x32xbf16>, vector<32x32xbf16>, vector<16x32xf32> -> vector<16x32xf32>
    %7 = arith.addf %3, %6 : vector<16x32xf32>
    %c0_6 = arith.constant 0 : index
    %c0_7 = arith.constant 0 : index
    %8 = vector.load %arg7[%c0_6, %c0_7] : memref<16x32xf32, #tpu.memory_space<vmem>>, vector<16x32xf32>
    tpu.vector_store %arg7[%c0_6, %c0_7], %7 {strides = array<i32>} : memref<16x32xf32, #tpu.memory_space<vmem>>, vector<16x32xf32>,
    %c0_i32_8 = arith.constant 0 : i32
    %9 = arith.cmpi eq, %arg2, %c0_i32_8 : i32
    %10 = arith.extui %9 : i1 to i32
    %c0_i32_9 = arith.constant 0 : i32
    %11 = arith.cmpi ne, %10, %c0_i32_9 : i32
    scf.if %11 {
      %c0_10 = arith.constant 0 : index
      %c0_11 = arith.constant 0 : index
      %12 = vector.load %arg7[%c0_10, %c0_11] : memref<16x32xf32, #tpu.memory_space<vmem>>, vector<16x32xf32>
      %c0_12 = arith.constant 0 : index
      %c0_13 = arith.constant 0 : index
      %13 = vector.load %arg5[%c0_12, %c0_13] : memref<1x32xbf16, #tpu.memory_space<vmem>>, vector<1x32xbf16>
      %14 = arith.extf %13 : vector<1x32xbf16> to vector<1x32xf32>
      %15 = vector.broadcast %14 : vector<1x32xf32> to vector<16x32xf32>
      %16 = arith.addf %12, %15 : vector<16x32xf32>
      %17 = arith.truncf %16 : vector<16x32xf32> to vector<16x32xbf16>
      %c0_14 = arith.constant 0 : index
      %c0_15 = arith.constant 0 : index
      %18 = vector.load %arg6[%c0_14, %c0_15] : memref<16x32xbf16, #tpu.memory_space<vmem>>, vector<16x32xbf16>
      tpu.vector_store %arg6[%c0_14, %c0_15], %17 {strides = array<i32>} : memref<16x32xbf16, #tpu.memory_space<vmem>>, vector<16x32xbf16>,
    } else {
    }
    return
  }
  func.func @transform_0(%arg0: i32, %arg1: i32, %arg2: i32) -> (i32, i32) {
    %c0_i32 = arith.constant 0 : i32
    return %arg0, %arg2 : i32, i32
  }
  func.func @transform_1(%arg0: i32, %arg1: i32, %arg2: i32) -> (i32, i32) {
    %c0_i32 = arith.constant 0 : i32
    return %arg2, %arg1 : i32, i32
  }
  func.func @transform_2(%arg0: i32, %arg1: i32, %arg2: i32) -> (i32, i32) {
    %c0_i32 = arith.constant 0 : i32
    %c0_i32_0 = arith.constant 0 : i32
    return %c0_i32, %arg1 : i32, i32
  }
  func.func @transform_3(%arg0: i32, %arg1: i32, %arg2: i32) -> (i32, i32) {
    %c0_i32 = arith.constant 0 : i32
    return %arg0, %arg1 : i32, i32
  }
}

module attributes {stable_mosaic.version = 11 : i64} {
  func.func @_matmul_kernel(%arg0: i32, %arg1: i32, %arg2: i32, %arg3: memref<16x32xbf16, #tpu.memory_space<vmem>>, %arg4: memref<32x96xbf16, #tpu.memory_space<vmem>>, %arg5: memref<1x96xbf16, #tpu.memory_space<vmem>>, %arg6: memref<16x96xbf16, #tpu.memory_space<vmem>>, %arg7: memref<16x96xf32, #tpu.memory_space<vmem>>) attributes {dimension_semantics = [#tpu.dimension_semantics<parallel>, #tpu.dimension_semantics<parallel>, #tpu.dimension_semantics<arbitrary>], iteration_bounds = array<i64: 1, 1, 1>, scalar_prefetch = 0 : i64, scratch_operands = 1 : i64, tpu.core_type = #tpu.core_type<tc>, window_params = [{transform_indices = @transform_0, window_bounds = array<i64: 16, 32>}, {transform_indices = @transform_1, window_bounds = array<i64: 32, 96>}, {transform_indices = @transform_2, window_bounds = array<i64: 1, 96>}, {transform_indices = @transform_3, window_bounds = array<i64: 16, 96>}]} {
    %c0_i32 = arith.constant 0 : i32
    %0 = arith.cmpi eq, %arg2, %c0_i32 : i32
    %1 = arith.extui %0 : i1 to i32
    %c0_i32_0 = arith.constant 0 : i32
    %2 = arith.cmpi ne, %1, %c0_i32_0 : i32
    scf.if %2 {
      %cst_10 = arith.constant 0.000000e+00 : f32
      %12 = vector.broadcast %cst_10 : f32 to vector<16x96xf32>
      %c0_11 = arith.constant 0 : index
      %c0_12 = arith.constant 0 : index
      %13 = vector.load %arg7[%c0_11, %c0_12] : memref<16x96xf32, #tpu.memory_space<vmem>>, vector<16x96xf32>
      tpu.vector_store %arg7[%c0_11, %c0_12], %12 {strides = array<i32>} : memref<16x96xf32, #tpu.memory_space<vmem>>, vector<16x96xf32>,
    } else {
    }
    %c0 = arith.constant 0 : index
    %c0_1 = arith.constant 0 : index
    %3 = vector.load %arg7[%c0, %c0_1] : memref<16x96xf32, #tpu.memory_space<vmem>>, vector<16x96xf32>
    %c0_2 = arith.constant 0 : index
    %c0_3 = arith.constant 0 : index
    %4 = vector.load %arg3[%c0_2, %c0_3] : memref<16x32xbf16, #tpu.memory_space<vmem>>, vector<16x32xbf16>
    %c0_4 = arith.constant 0 : index
    %c0_5 = arith.constant 0 : index
    %5 = vector.load %arg4[%c0_4, %c0_5] : memref<32x96xbf16, #tpu.memory_space<vmem>>, vector<32x96xbf16>
    %cst = arith.constant dense<0.000000e+00> : vector<16x96xf32>
    %6 = tpu.matmul %4, %5, %cst {dimension_numbers = #tpu.dot_dimension_numbers<[1], [0], [0], [1], [0, 0, 1, 1], [], []>} : vector<16x32xbf16>, vector<32x96xbf16>, vector<16x96xf32> -> vector<16x96xf32>
    %7 = arith.addf %3, %6 : vector<16x96xf32>
    %c0_6 = arith.constant 0 : index
    %c0_7 = arith.constant 0 : index
    %8 = vector.load %arg7[%c0_6, %c0_7] : memref<16x96xf32, #tpu.memory_space<vmem>>, vector<16x96xf32>
    tpu.vector_store %arg7[%c0_6, %c0_7], %7 {strides = array<i32>} : memref<16x96xf32, #tpu.memory_space<vmem>>, vector<16x96xf32>,
    %c0_i32_8 = arith.constant 0 : i32
    %9 = arith.cmpi eq, %arg2, %c0_i32_8 : i32
    %10 = arith.extui %9 : i1 to i32
    %c0_i32_9 = arith.constant 0 : i32
    %11 = arith.cmpi ne, %10, %c0_i32_9 : i32
    scf.if %11 {
      %c0_10 = arith.constant 0 : index
      %c0_11 = arith.constant 0 : index
      %12 = vector.load %arg7[%c0_10, %c0_11] : memref<16x96xf32, #tpu.memory_space<vmem>>, vector<16x96xf32>
      %c0_12 = arith.constant 0 : index
      %c0_13 = arith.constant 0 : index
      %13 = vector.load %arg5[%c0_12, %c0_13] : memref<1x96xbf16, #tpu.memory_space<vmem>>, vector<1x96xbf16>
      %14 = arith.extf %13 : vector<1x96xbf16> to vector<1x96xf32>
      %15 = vector.broadcast %14 : vector<1x96xf32> to vector<16x96xf32>
      %16 = arith.addf %12, %15 : vector<16x96xf32>
      %17 = arith.truncf %16 : vector<16x96xf32> to vector<16x96xbf16>
      %c0_14 = arith.constant 0 : index
      %c0_15 = arith.constant 0 : index
      %18 = vector.load %arg6[%c0_14, %c0_15] : memref<16x96xbf16, #tpu.memory_space<vmem>>, vector<16x96xbf16>
      tpu.vector_store %arg6[%c0_14, %c0_15], %17 {strides = array<i32>} : memref<16x96xbf16, #tpu.memory_space<vmem>>, vector<16x96xbf16>,
    } else {
    }
    return
  }
  func.func @transform_0(%arg0: i32, %arg1: i32, %arg2: i32) -> (i32, i32) {
    %c0_i32 = arith.constant 0 : i32
    return %arg0, %arg2 : i32, i32
  }
  func.func @transform_1(%arg0: i32, %arg1: i32, %arg2: i32) -> (i32, i32) {
    %c0_i32 = arith.constant 0 : i32
    return %arg2, %arg1 : i32, i32
  }
  func.func @transform_2(%arg0: i32, %arg1: i32, %arg2: i32) -> (i32, i32) {
    %c0_i32 = arith.constant 0 : i32
    %c0_i32_0 = arith.constant 0 : i32
    return %c0_i32, %arg1 : i32, i32
  }
  func.func @transform_3(%arg0: i32, %arg1: i32, %arg2: i32) -> (i32, i32) {
    %c0_i32 = arith.constant 0 : i32
    return %arg0, %arg1 : i32, i32
  }
}

module attributes {stable_mosaic.version = 11 : i64} {
  func.func @_attn_kernel(%arg0: i32, %arg1: i32, %arg2: memref<1x1x8x8xbf16, #tpu.memory_space<vmem>>, %arg3: memref<1x1x8x8xbf16, #tpu.memory_space<vmem>>, %arg4: memref<1x1x8x8xbf16, #tpu.memory_space<vmem>>, %arg5: memref<1x1x8x8xbf16, #tpu.memory_space<vmem>>) attributes {dimension_semantics = [#tpu.dimension_semantics<parallel>, #tpu.dimension_semantics<parallel>], iteration_bounds = array<i64: 2, 4>, scalar_prefetch = 0 : i64, scratch_operands = 0 : i64, tpu.core_type = #tpu.core_type<tc>, window_params = [{transform_indices = @transform_0, window_bounds = array<i64: 1, 1, 8, 8>}, {transform_indices = @transform_1, window_bounds = array<i64: 1, 1, 8, 8>}, {transform_indices = @transform_2, window_bounds = array<i64: 1, 1, 8, 8>}, {transform_indices = @transform_3, window_bounds = array<i64: 1, 1, 8, 8>}]} {
    %c0 = arith.constant 0 : index
    %c0_0 = arith.constant 0 : index
    %c0_1 = arith.constant 0 : index
    %c0_2 = arith.constant 0 : index
    %0 = vector.load %arg2[%c0, %c0_0, %c0_1, %c0_2] : memref<1x1x8x8xbf16, #tpu.memory_space<vmem>>, vector<1x1x8x8xbf16>
    %1 = vector.shape_cast %0 : vector<1x1x8x8xbf16> to vector<8x8xbf16>
    %c0_3 = arith.constant 0 : index
    %c0_4 = arith.constant 0 : index
    %c0_5 = arith.constant 0 : index
    %c0_6 = arith.constant 0 : index
    %2 = vector.load %arg3[%c0_3, %c0_4, %c0_5, %c0_6] : memref<1x1x8x8xbf16, #tpu.memory_space<vmem>>, vector<1x1x8x8xbf16>
    %3 = vector.shape_cast %2 : vector<1x1x8x8xbf16> to vector<8x8xbf16>
    %c0_7 = arith.constant 0 : index
    %c0_8 = arith.constant 0 : index
    %c0_9 = arith.constant 0 : index
    %c0_10 = arith.constant 0 : index
    %4 = vector.load %arg4[%c0_7, %c0_8, %c0_9, %c0_10] : memref<1x1x8x8xbf16, #tpu.memory_space<vmem>>, vector<1x1x8x8xbf16>
    %5 = vector.shape_cast %4 : vector<1x1x8x8xbf16> to vector<8x8xbf16>
    %cst = arith.constant dense<0.000000e+00> : vector<8x8xf32>
    %6 = tpu.matmul %1, %3, %cst {dimension_numbers = #tpu.dot_dimension_numbers<[1], [1], [0], [0], [0, 0, 1, 0], [], []>} : vector<8x8xbf16>, vector<8x8xbf16>, vector<8x8xf32> -> vector<8x8xf32>
    %7 = tpu.iota {dimensions = array<i32: 0>} : vector<8x8xi32>
    %8 = tpu.iota {dimensions = array<i32: 1>} : vector<8x8xi32>
    %9 = arith.cmpi sle, %8, %7 : vector<8x8xi32>
    %cst_11 = arith.constant -1.000000e+30 : f32
    %10 = vector.broadcast %cst_11 : f32 to vector<8x8xf32>
    %11 = arith.select %9, %6, %10 : vector<8x8xi1>, vector<8x8xf32>
    %cst_12 = arith.constant dense<0xFF800000> : vector<8xf32>
    %12 = vector.multi_reduction <maximumf>, %11, %cst_12 [1] : vector<8x8xf32> to vector<8xf32>
    %13 = vector.shape_cast %12 : vector<8xf32> to vector<8x1xf32>
    %14 = vector.broadcast %13 : vector<8x1xf32> to vector<8x8xf32>
    %15 = arith.subf %11, %14 : vector<8x8xf32>
    %16 = math.exp %15 : vector<8x8xf32>
    %cst_13 = arith.constant dense<0.000000e+00> : vector<8xf32>
    %17 = vector.multi_reduction <add>, %16, %cst_13 [1] : vector<8x8xf32> to vector<8xf32>
    %18 = vector.shape_cast %17 : vector<8xf32> to vector<8x1xf32>
    %19 = tpu.reciprocal %18 {approx = true} : vector<8x1xf32> -> vector<8x1xf32>
    %20 = vector.broadcast %19 : vector<8x1xf32> to vector<8x8xf32>
    %21 = arith.mulf %16, %20 : vector<8x8xf32>
    %22 = arith.truncf %21 : vector<8x8xf32> to vector<8x8xbf16>
    %cst_14 = arith.constant dense<0.000000e+00> : vector<8x8xf32>
    %23 = tpu.matmul %22, %5, %cst_14 {dimension_numbers = #tpu.dot_dimension_numbers<[1], [0], [0], [1], [0, 0, 1, 1], [], []>} : vector<8x8xbf16>, vector<8x8xbf16>, vector<8x8xf32> -> vector<8x8xf32>
    %24 = arith.truncf %23 : vector<8x8xf32> to vector<8x8xbf16>
    %c0_15 = arith.constant 0 : index
    %c0_16 = arith.constant 0 : index
    %c0_17 = arith.constant 0 : index
    %c0_18 = arith.constant 0 : index
    %25 = vector.load %arg5[%c0_15, %c0_16, %c0_17, %c0_18] : memref<1x1x8x8xbf16, #tpu.memory_space<vmem>>, vector<1x1x8x8xbf16>
    %26 = vector.shape_cast %25 : vector<1x1x8x8xbf16> to vector<8x8xbf16>
    %27 = vector.shape_cast %24 : vector<8x8xbf16> to vector<1x1x8x8xbf16>
    tpu.vector_store %arg5[%c0_15, %c0_16, %c0_17, %c0_18], %27 {strides = array<i32>} : memref<1x1x8x8xbf16, #tpu.memory_space<vmem>>, vector<1x1x8x8xbf16>,
    return
  }
  func.func @transform_0(%arg0: i32, %arg1: i32) -> (i32, i32, i32, i32) {
    %c0_i32 = arith.constant 0 : i32
    %c0_i32_0 = arith.constant 0 : i32
    %c0_i32_1 = arith.constant 0 : i32
    return %arg0, %arg1, %c0_i32, %c0_i32_0 : i32, i32, i32, i32
  }
  func.func @transform_1(%arg0: i32, %arg1: i32) -> (i32, i32, i32, i32) {
    %c0_i32 = arith.constant 0 : i32
    %c0_i32_0 = arith.constant 0 : i32
    %c0_i32_1 = arith.constant 0 : i32
    return %arg0, %arg1, %c0_i32, %c0_i32_0 : i32, i32, i32, i32
  }
  func.func @transform_2(%arg0: i32, %arg1: i32) -> (i32, i32, i32, i32) {
    %c0_i32 = arith.constant 0 : i32
    %c0_i32_0 = arith.constant 0 : i32
    %c0_i32_1 = arith.constant 0 : i32
    return %arg0, %arg1, %c0_i32, %c0_i32_0 : i32, i32, i32, i32
  }
  func.func @transform_3(%arg0: i32, %arg1: i32) -> (i32, i32, i32, i32) {
    %c0_i32 = arith.constant 0 : i32
    %c0_i32_0 = arith.constant 0 : i32
    %c0_i32_1 = arith.constant 0 : i32
    return %arg0, %arg1, %c0_i32, %c0_i32_0 : i32, i32, i32, i32
  }
}

module attributes {stable_mosaic.version = 11 : i64} {
  func.func @_linear_ln_kernel(%arg0: i32, %arg1: i32, %arg2: memref<16x32xbf16, #tpu.memory_space<vmem>>, %arg3: memref<32x32xbf16, #tpu.memory_space<vmem>>, %arg4: memref<1x32xbf16, #tpu.memory_space<vmem>>, %arg5: memref<16x32xbf16, #tpu.memory_space<vmem>>, %arg6: memref<1x32xbf16, #tpu.memory_space<vmem>>, %arg7: memref<1x32xbf16, #tpu.memory_space<vmem>>, %arg8: memref<16x32xbf16, #tpu.memory_space<vmem>>, %arg9: memref<16x32xf32, #tpu.memory_space<vmem>>) attributes {dimension_semantics = [#tpu.dimension_semantics<parallel>, #tpu.dimension_semantics<arbitrary>], iteration_bounds = array<i64: 1, 1>, scalar_prefetch = 0 : i64, scratch_operands = 1 : i64, tpu.core_type = #tpu.core_type<tc>, window_params = [{transform_indices = @transform_0, window_bounds = array<i64: 16, 32>}, {transform_indices = @transform_1, window_bounds = array<i64: 32, 32>}, {pipeline_mode = #tpu.pipeline_mode<synchronous>, transform_indices = @transform_2, window_bounds = array<i64: 1, 32>}, {transform_indices = @transform_3, window_bounds = array<i64: 16, 32>}, {pipeline_mode = #tpu.pipeline_mode<synchronous>, transform_indices = @transform_4, window_bounds = array<i64: 1, 32>}, {pipeline_mode = #tpu.pipeline_mode<synchronous>, transform_indices = @transform_5, window_bounds = array<i64: 1, 32>}, {transform_indices = @transform_6, window_bounds = array<i64: 16, 32>}]} {
    %c0_i32 = arith.constant 0 : i32
    %0 = arith.cmpi eq, %arg1, %c0_i32 : i32
    %1 = arith.extui %0 : i1 to i32
    %c0_i32_0 = arith.constant 0 : i32
    %2 = arith.cmpi ne, %1, %c0_i32_0 : i32
    scf.if %2 {
      %cst_10 = arith.constant 0.000000e+00 : f32
      %12 = vector.broadcast %cst_10 : f32 to vector<16x32xf32>
      %c0_11 = arith.constant 0 : index
      %c0_12 = arith.constant 0 : index
      %13 = vector.load %arg9[%c0_11, %c0_12] : memref<16x32xf32, #tpu.memory_space<vmem>>, vector<16x32xf32>
      tpu.vector_store %arg9[%c0_11, %c0_12], %12 {strides = array<i32>} : memref<16x32xf32, #tpu.memory_space<vmem>>, vector<16x32xf32>,
    } else {
    }
    %c0 = arith.constant 0 : index
    %c0_1 = arith.constant 0 : index
    %3 = vector.load %arg9[%c0, %c0_1] : memref<16x32xf32, #tpu.memory_space<vmem>>, vector<16x32xf32>
    %c0_2 = arith.constant 0 : index
    %c0_3 = arith.constant 0 : index
    %4 = vector.load %arg2[%c0_2, %c0_3] : memref<16x32xbf16, #tpu.memory_space<vmem>>, vector<16x32xbf16>
    %c0_4 = arith.constant 0 : index
    %c0_5 = arith.constant 0 : index
    %5 = vector.load %arg3[%c0_4, %c0_5] : memref<32x32xbf16, #tpu.memory_space<vmem>>, vector<32x32xbf16>
    %cst = arith.constant dense<0.000000e+00> : vector<16x32xf32>
    %6 = tpu.matmul %4, %5, %cst {dimension_numbers = #tpu.dot_dimension_numbers<[1], [0], [0], [1], [0, 0, 1, 1], [], []>} : vector<16x32xbf16>, vector<32x32xbf16>, vector<16x32xf32> -> vector<16x32xf32>
    %7 = arith.addf %3, %6 : vector<16x32xf32>
    %c0_6 = arith.constant 0 : index
    %c0_7 = arith.constant 0 : index
    %8 = vector.load %arg9[%c0_6, %c0_7] : memref<16x32xf32, #tpu.memory_space<vmem>>, vector<16x32xf32>
    tpu.vector_store %arg9[%c0_6, %c0_7], %7 {strides = array<i32>} : memref<16x32xf32, #tpu.memory_space<vmem>>, vector<16x32xf32>,
    %c0_i32_8 = arith.constant 0 : i32
    %9 = arith.cmpi eq, %arg1, %c0_i32_8 : i32
    %10 = arith.extui %9 : i1 to i32
    %c0_i32_9 = arith.constant 0 : i32
    %11 = arith.cmpi ne, %10, %c0_i32_9 : i32
    scf.if %11 {
      %c0_10 = arith.constant 0 : index
      %c0_11 = arith.constant 0 : index
      %12 = vector.load %arg9[%c0_10, %c0_11] : memref<16x32xf32, #tpu.memory_space<vmem>>, vector<16x32xf32>
      %c0_12 = arith.constant 0 : index
      %c0_13 = arith.constant 0 : index
      %13 = vector.load %arg4[%c0_12, %c0_13] : memref<1x32xbf16, #tpu.memory_space<vmem>>, vector<1x32xbf16>
      %14 = arith.extf %13 : vector<1x32xbf16> to vector<1x32xf32>
      %15 = vector.broadcast %14 : vector<1x32xf32> to vector<16x32xf32>
      %16 = arith.addf %12, %15 : vector<16x32xf32>
      %c0_14 = arith.constant 0 : index
      %c0_15 = arith.constant 0 : index
      %17 = vector.load %arg5[%c0_14, %c0_15] : memref<16x32xbf16, #tpu.memory_space<vmem>>, vector<16x32xbf16>
      %18 = arith.extf %17 : vector<16x32xbf16> to vector<16x32xf32>
      %19 = arith.addf %16, %18 : vector<16x32xf32>
      %cst_16 = arith.constant dense<0.000000e+00> : vector<16xf32>
      %20 = vector.multi_reduction <add>, %19, %cst_16 [1] : vector<16x32xf32> to vector<16xf32>
      %21 = vector.shape_cast %20 : vector<16xf32> to vector<16x1xf32>
      %cst_17 = arith.constant 3.200000e+01 : f32
      %22 = vector.broadcast %cst_17 : f32 to vector<16x1xf32>
      %23 = arith.divf %21, %22 : vector<16x1xf32>
      %24 = vector.broadcast %23 : vector<16x1xf32> to vector<16x32xf32>
      %25 = arith.subf %19, %24 : vector<16x32xf32>
      %26 = arith.mulf %25, %25 : vector<16x32xf32>
      %cst_18 = arith.constant dense<0.000000e+00> : vector<16xf32>
      %27 = vector.multi_reduction <add>, %26, %cst_18 [1] : vector<16x32xf32> to vector<16xf32>
      %28 = vector.shape_cast %27 : vector<16xf32> to vector<16x1xf32>
      %cst_19 = arith.constant 3.200000e+01 : f32
      %29 = vector.broadcast %cst_19 : f32 to vector<16x1xf32>
      %30 = arith.divf %28, %29 : vector<16x1xf32>
      %31 = vector.broadcast %23 : vector<16x1xf32> to vector<16x32xf32>
      %32 = arith.subf %19, %31 : vector<16x32xf32>
      %cst_20 = arith.constant 9.99999974E-6 : f32
      %33 = vector.broadcast %cst_20 : f32 to vector<16x1xf32>
      %34 = arith.addf %30, %33 : vector<16x1xf32>
      %35 = math.rsqrt %34 : vector<16x1xf32>
      %36 = vector.broadcast %35 : vector<16x1xf32> to vector<16x32xf32>
      %37 = arith.mulf %32, %36 : vector<16x32xf32>
      %c0_21 = arith.constant 0 : index
      %c0_22 = arith.constant 0 : index
      %38 = vector.load %arg6[%c0_21, %c0_22] : memref<1x32xbf16, #tpu.memory_space<vmem>>, vector<1x32xbf16>
      %39 = arith.extf %38 : vector<1x32xbf16> to vector<1x32xf32>
      %40 = vector.broadcast %39 : vector<1x32xf32> to vector<16x32xf32>
      %41 = arith.mulf %37, %40 : vector<16x32xf32>
      %c0_23 = arith.constant 0 : index
      %c0_24 = arith.constant 0 : index
      %42 = vector.load %arg7[%c0_23, %c0_24] : memref<1x32xbf16, #tpu.memory_space<vmem>>, vector<1x32xbf16>
      %43 = arith.extf %42 : vector<1x32xbf16> to vector<1x32xf32>
      %44 = vector.broadcast %43 : vector<1x32xf32> to vector<16x32xf32>
      %45 = arith.addf %41, %44 : vector<16x32xf32>
      %46 = arith.truncf %45 : vector<16x32xf32> to vector<16x32xbf16>
      %c0_25 = arith.constant 0 : index
      %c0_26 = arith.constant 0 : index
      %47 = vector.load %arg8[%c0_25, %c0_26] : memref<16x32xbf16, #tpu.memory_space<vmem>>, vector<16x32xbf16>
      tpu.vector_store %arg8[%c0_25, %c0_26], %46 {strides = array<i32>} : memref<16x32xbf16, #tpu.memory_space<vmem>>, vector<16x32xbf16>,
    } else {
    }
    return
  }
  func.func @transform_0(%arg0: i32, %arg1: i32) -> (i32, i32) {
    %c0_i32 = arith.constant 0 : i32
    return %arg0, %arg1 : i32, i32
  }
  func.func @transform_1(%arg0: i32, %arg1: i32) -> (i32, i32) {
    %c0_i32 = arith.constant 0 : i32
    %c0_i32_0 = arith.constant 0 : i32
    return %arg1, %c0_i32 : i32, i32
  }
  func.func @transform_2(%arg0: i32, %arg1: i32) -> (i32, i32) {
    %c0_i32 = arith.constant 0 : i32
    %c0_i32_0 = arith.constant 0 : i32
    %c0_i32_1 = arith.constant 0 : i32
    return %c0_i32, %c0_i32_0 : i32, i32
  }
  func.func @transform_3(%arg0: i32, %arg1: i32) -> (i32, i32) {
    %c0_i32 = arith.constant 0 : i32
    %c0_i32_0 = arith.constant 0 : i32
    return %arg0, %c0_i32 : i32, i32
  }
  func.func @transform_4(%arg0: i32, %arg1: i32) -> (i32, i32) {
    %c0_i32 = arith.constant 0 : i32
    %c0_i32_0 = arith.constant 0 : i32
    %c0_i32_1 = arith.constant 0 : i32
    return %c0_i32, %c0_i32_0 : i32, i32
  }
  func.func @transform_5(%arg0: i32, %arg1: i32) -> (i32, i32) {
    %c0_i32 = arith.constant 0 : i32
    %c0_i32_0 = arith.constant 0 : i32
    %c0_i32_1 = arith.constant 0 : i32
    return %c0_i32, %c0_i32_0 : i32, i32
  }
  func.func @transform_6(%arg0: i32, %arg1: i32) -> (i32, i32) {
    %c0_i32 = arith.constant 0 : i32
    %c0_i32_0 = arith.constant 0 : i32
    return %arg0, %c0_i32 : i32, i32
  }
}

module attributes {stable_mosaic.version = 11 : i64} {
  func.func @_attn_kernel(%arg0: i32, %arg1: i32, %arg2: memref<1x1x8x8xbf16, #tpu.memory_space<vmem>>, %arg3: memref<1x1x8x8xbf16, #tpu.memory_space<vmem>>, %arg4: memref<1x1x8x8xbf16, #tpu.memory_space<vmem>>, %arg5: memref<1x1x8x8xbf16, #tpu.memory_space<vmem>>) attributes {dimension_semantics = [#tpu.dimension_semantics<parallel>, #tpu.dimension_semantics<parallel>], iteration_bounds = array<i64: 2, 4>, scalar_prefetch = 0 : i64, scratch_operands = 0 : i64, tpu.core_type = #tpu.core_type<tc>, window_params = [{transform_indices = @transform_0, window_bounds = array<i64: 1, 1, 8, 8>}, {transform_indices = @transform_1, window_bounds = array<i64: 1, 1, 8, 8>}, {transform_indices = @transform_2, window_bounds = array<i64: 1, 1, 8, 8>}, {transform_indices = @transform_3, window_bounds = array<i64: 1, 1, 8, 8>}]} {
    %c0 = arith.constant 0 : index
    %c0_0 = arith.constant 0 : index
    %c0_1 = arith.constant 0 : index
    %c0_2 = arith.constant 0 : index
    %0 = vector.load %arg2[%c0, %c0_0, %c0_1, %c0_2] : memref<1x1x8x8xbf16, #tpu.memory_space<vmem>>, vector<1x1x8x8xbf16>
    %1 = vector.shape_cast %0 : vector<1x1x8x8xbf16> to vector<8x8xbf16>
    %c0_3 = arith.constant 0 : index
    %c0_4 = arith.constant 0 : index
    %c0_5 = arith.constant 0 : index
    %c0_6 = arith.constant 0 : index
    %2 = vector.load %arg3[%c0_3, %c0_4, %c0_5, %c0_6] : memref<1x1x8x8xbf16, #tpu.memory_space<vmem>>, vector<1x1x8x8xbf16>
    %3 = vector.shape_cast %2 : vector<1x1x8x8xbf16> to vector<8x8xbf16>
    %c0_7 = arith.constant 0 : index
    %c0_8 = arith.constant 0 : index
    %c0_9 = arith.constant 0 : index
    %c0_10 = arith.constant 0 : index
    %4 = vector.load %arg4[%c0_7, %c0_8, %c0_9, %c0_10] : memref<1x1x8x8xbf16, #tpu.memory_space<vmem>>, vector<1x1x8x8xbf16>
    %5 = vector.shape_cast %4 : vector<1x1x8x8xbf16> to vector<8x8xbf16>
    %cst = arith.constant dense<0.000000e+00> : vector<8x8xf32>
    %6 = tpu.matmul %1, %3, %cst {dimension_numbers = #tpu.dot_dimension_numbers<[1], [1], [0], [0], [0, 0, 1, 0], [], []>} : vector<8x8xbf16>, vector<8x8xbf16>, vector<8x8xf32> -> vector<8x8xf32>
    %cst_11 = arith.constant dense<0xFF800000> : vector<8xf32>
    %7 = vector.multi_reduction <maximumf>, %6, %cst_11 [1] : vector<8x8xf32> to vector<8xf32>
    %8 = vector.shape_cast %7 : vector<8xf32> to vector<8x1xf32>
    %9 = vector.broadcast %8 : vector<8x1xf32> to vector<8x8xf32>
    %10 = arith.subf %6, %9 : vector<8x8xf32>
    %11 = math.exp %10 : vector<8x8xf32>
    %cst_12 = arith.constant dense<0.000000e+00> : vector<8xf32>
    %12 = vector.multi_reduction <add>, %11, %cst_12 [1] : vector<8x8xf32> to vector<8xf32>
    %13 = vector.shape_cast %12 : vector<8xf32> to vector<8x1xf32>
    %14 = tpu.reciprocal %13 {approx = true} : vector<8x1xf32> -> vector<8x1xf32>
    %15 = vector.broadcast %14 : vector<8x1xf32> to vector<8x8xf32>
    %16 = arith.mulf %11, %15 : vector<8x8xf32>
    %17 = arith.truncf %16 : vector<8x8xf32> to vector<8x8xbf16>
    %cst_13 = arith.constant dense<0.000000e+00> : vector<8x8xf32>
    %18 = tpu.matmul %17, %5, %cst_13 {dimension_numbers = #tpu.dot_dimension_numbers<[1], [0], [0], [1], [0, 0, 1, 1], [], []>} : vector<8x8xbf16>, vector<8x8xbf16>, vector<8x8xf32> -> vector<8x8xf32>
    %19 = arith.truncf %18 : vector<8x8xf32> to vector<8x8xbf16>
    %c0_14 = arith.constant 0 : index
    %c0_15 = arith.constant 0 : index
    %c0_16 = arith.constant 0 : index
    %c0_17 = arith.constant 0 : index
    %20 = vector.load %arg5[%c0_14, %c0_15, %c0_16, %c0_17] : memref<1x1x8x8xbf16, #tpu.memory_space<vmem>>, vector<1x1x8x8xbf16>
    %21 = vector.shape_cast %20 : vector<1x1x8x8xbf16> to vector<8x8xbf16>
    %22 = vector.shape_cast %19 : vector<8x8xbf16> to vector<1x1x8x8xbf16>
    tpu.vector_store %arg5[%c0_14, %c0_15, %c0_16, %c0_17], %22 {strides = array<i32>} : memref<1x1x8x8xbf16, #tpu.memory_space<vmem>>, vector<1x1x8x8xbf16>,
    return
  }
  func.func @transform_0(%arg0: i32, %arg1: i32) -> (i32, i32, i32, i32) {
    %c0_i32 = arith.constant 0 : i32
    %c0_i32_0 = arith.constant 0 : i32
    %c0_i32_1 = arith.constant 0 : i32
    return %arg0, %arg1, %c0_i32, %c0_i32_0 : i32, i32, i32, i32
  }
  func.func @transform_1(%arg0: i32, %arg1: i32) -> (i32, i32, i32, i32) {
    %c0_i32 = arith.constant 0 : i32
    %c0_i32_0 = arith.constant 0 : i32
    %c0_i32_1 = arith.constant 0 : i32
    return %arg0, %arg1, %c0_i32, %c0_i32_0 : i32, i32, i32, i32
  }
  func.func @transform_2(%arg0: i32, %arg1: i32) -> (i32, i32, i32, i32) {
    %c0_i32 = arith.constant 0 : i32
    %c0_i32_0 = arith.constant 0 : i32
    %c0_i32_1 = arith.constant 0 : i32
    return %arg0, %arg1, %c0_i32, %c0_i32_0 : i32, i32, i32, i32
  }
  func.func @transform_3(%arg0: i32, %arg1: i32) -> (i32, i32, i32, i32) {
    %c0_i32 = arith.constant 0 : i32
    %c0_i32_0 = arith.constant 0 : i32
    %c0_i32_1 = arith.constant 0 : i32
    return %arg0, %arg1, %c0_i32, %c0_i32_0 : i32, i32, i32, i32
  }
}

module attributes {stable_mosaic.version = 11 : i64} {
  func.func @_ffn_ln_kernel(%arg0: i32, %arg1: i32, %arg2: memref<16x32xbf16, #tpu.memory_space<vmem>>, %arg3: memref<32x128xbf16, #tpu.memory_space<vmem>>, %arg4: memref<1x128xbf16, #tpu.memory_space<vmem>>, %arg5: memref<128x32xbf16, #tpu.memory_space<vmem>>, %arg6: memref<1x32xbf16, #tpu.memory_space<vmem>>, %arg7: memref<16x32xbf16, #tpu.memory_space<vmem>>, %arg8: memref<1x32xbf16, #tpu.memory_space<vmem>>, %arg9: memref<1x32xbf16, #tpu.memory_space<vmem>>, %arg10: memref<16x32xbf16, #tpu.memory_space<vmem>>, %arg11: memref<16x32xf32, #tpu.memory_space<vmem>>) attributes {dimension_semantics = [#tpu.dimension_semantics<parallel>, #tpu.dimension_semantics<arbitrary>], iteration_bounds = array<i64: 1, 1>, scalar_prefetch = 0 : i64, scratch_operands = 1 : i64, tpu.core_type = #tpu.core_type<tc>, window_params = [{transform_indices = @transform_0, window_bounds = array<i64: 16, 32>}, {transform_indices = @transform_1, window_bounds = array<i64: 32, 128>}, {transform_indices = @transform_2, window_bounds = array<i64: 1, 128>}, {transform_indices = @transform_3, window_bounds = array<i64: 128, 32>}, {pipeline_mode = #tpu.pipeline_mode<synchronous>, transform_indices = @transform_4, window_bounds = array<i64: 1, 32>}, {transform_indices = @transform_5, window_bounds = array<i64: 16, 32>}, {pipeline_mode = #tpu.pipeline_mode<synchronous>, transform_indices = @transform_6, window_bounds = array<i64: 1, 32>}, {pipeline_mode = #tpu.pipeline_mode<synchronous>, transform_indices = @transform_7, window_bounds = array<i64: 1, 32>}, {transform_indices = @transform_8, window_bounds = array<i64: 16, 32>}]} {
    %c0_i32 = arith.constant 0 : i32
    %0 = arith.cmpi eq, %arg1, %c0_i32 : i32
    %1 = arith.extui %0 : i1 to i32
    %c0_i32_0 = arith.constant 0 : i32
    %2 = arith.cmpi ne, %1, %c0_i32_0 : i32
    scf.if %2 {
      %cst_16 = arith.constant 0.000000e+00 : f32
      %21 = vector.broadcast %cst_16 : f32 to vector<16x32xf32>
      %c0_17 = arith.constant 0 : index
      %c0_18 = arith.constant 0 : index
      %22 = vector.load %arg11[%c0_17, %c0_18] : memref<16x32xf32, #tpu.memory_space<vmem>>, vector<16x32xf32>
      tpu.vector_store %arg11[%c0_17, %c0_18], %21 {strides = array<i32>} : memref<16x32xf32, #tpu.memory_space<vmem>>, vector<16x32xf32>,
    } else {
    }
    %c0 = arith.constant 0 : index
    %c0_1 = arith.constant 0 : index
    %3 = vector.load %arg2[%c0, %c0_1] : memref<16x32xbf16, #tpu.memory_space<vmem>>, vector<16x32xbf16>
    %c0_2 = arith.constant 0 : index
    %c0_3 = arith.constant 0 : index
    %4 = vector.load %arg3[%c0_2, %c0_3] : memref<32x128xbf16, #tpu.memory_space<vmem>>, vector<32x128xbf16>
    %cst = arith.constant dense<0.000000e+00> : vector<16x128xf32>
    %5 = tpu.matmul %3, %4, %cst {dimension_numbers = #tpu.dot_dimension_numbers<[1], [0], [0], [1], [0, 0, 1, 1], [], []>} : vector<16x32xbf16>, vector<32x128xbf16>, vector<16x128xf32> -> vector<16x128xf32>
    %c0_4 = arith.constant 0 : index
    %c0_5 = arith.constant 0 : index
    %6 = vector.load %arg4[%c0_4, %c0_5] : memref<1x128xbf16, #tpu.memory_space<vmem>>, vector<1x128xbf16>
    %7 = arith.extf %6 : vector<1x128xbf16> to vector<1x128xf32>
    %8 = vector.broadcast %7 : vector<1x128xf32> to vector<16x128xf32>
    %9 = arith.addf %5, %8 : vector<16x128xf32>
    %cst_6 = arith.constant 0.000000e+00 : f32
    %10 = vector.broadcast %cst_6 : f32 to vector<16x128xf32>
    %11 = arith.maximumf %9, %10 : vector<16x128xf32>
    %c0_7 = arith.constant 0 : index
    %c0_8 = arith.constant 0 : index
    %12 = vector.load %arg11[%c0_7, %c0_8] : memref<16x32xf32, #tpu.memory_space<vmem>>, vector<16x32xf32>
    %13 = arith.truncf %11 : vector<16x128xf32> to vector<16x128xbf16>
    %c0_9 = arith.constant 0 : index
    %c0_10 = arith.constant 0 : index
    %14 = vector.load %arg5[%c0_9, %c0_10] : memref<128x32xbf16, #tpu.memory_space<vmem>>, vector<128x32xbf16>
    %cst_11 = arith.constant dense<0.000000e+00> : vector<16x32xf32>
    %15 = tpu.matmul %13, %14, %cst_11 {dimension_numbers = #tpu.dot_dimension_numbers<[1], [0], [0], [1], [0, 0, 1, 1], [], []>} : vector<16x128xbf16>, vector<128x32xbf16>, vector<16x32xf32> -> vector<16x32xf32>
    %16 = arith.addf %12, %15 : vector<16x32xf32>
    %c0_12 = arith.constant 0 : index
    %c0_13 = arith.constant 0 : index
    %17 = vector.load %arg11[%c0_12, %c0_13] : memref<16x32xf32, #tpu.memory_space<vmem>>, vector<16x32xf32>
    tpu.vector_store %arg11[%c0_12, %c0_13], %16 {strides = array<i32>} : memref<16x32xf32, #tpu.memory_space<vmem>>, vector<16x32xf32>,
    %c0_i32_14 = arith.constant 0 : i32
    %18 = arith.cmpi eq, %arg1, %c0_i32_14 : i32
    %19 = arith.extui %18 : i1 to i32
    %c0_i32_15 = arith.constant 0 : i32
    %20 = arith.cmpi ne, %19, %c0_i32_15 : i32
    scf.if %20 {
      %c0_16 = arith.constant 0 : index
      %c0_17 = arith.constant 0 : index
      %21 = vector.load %arg11[%c0_16, %c0_17] : memref<16x32xf32, #tpu.memory_space<vmem>>, vector<16x32xf32>
      %c0_18 = arith.constant 0 : index
      %c0_19 = arith.constant 0 : index
      %22 = vector.load %arg6[%c0_18, %c0_19] : memref<1x32xbf16, #tpu.memory_space<vmem>>, vector<1x32xbf16>
      %23 = arith.extf %22 : vector<1x32xbf16> to vector<1x32xf32>
      %24 = vector.broadcast %23 : vector<1x32xf32> to vector<16x32xf32>
      %25 = arith.addf %21, %24 : vector<16x32xf32>
      %c0_20 = arith.constant 0 : index
      %c0_21 = arith.constant 0 : index
      %26 = vector.load %arg7[%c0_20, %c0_21] : memref<16x32xbf16, #tpu.memory_space<vmem>>, vector<16x32xbf16>
      %27 = arith.extf %26 : vector<16x32xbf16> to vector<16x32xf32>
      %28 = arith.addf %25, %27 : vector<16x32xf32>
      %cst_22 = arith.constant dense<0.000000e+00> : vector<16xf32>
      %29 = vector.multi_reduction <add>, %28, %cst_22 [1] : vector<16x32xf32> to vector<16xf32>
      %30 = vector.shape_cast %29 : vector<16xf32> to vector<16x1xf32>
      %cst_23 = arith.constant 3.200000e+01 : f32
      %31 = vector.broadcast %cst_23 : f32 to vector<16x1xf32>
      %32 = arith.divf %30, %31 : vector<16x1xf32>
      %33 = vector.broadcast %32 : vector<16x1xf32> to vector<16x32xf32>
      %34 = arith.subf %28, %33 : vector<16x32xf32>
      %35 = arith.mulf %34, %34 : vector<16x32xf32>
      %cst_24 = arith.constant dense<0.000000e+00> : vector<16xf32>
      %36 = vector.multi_reduction <add>, %35, %cst_24 [1] : vector<16x32xf32> to vector<16xf32>
      %37 = vector.shape_cast %36 : vector<16xf32> to vector<16x1xf32>
      %cst_25 = arith.constant 3.200000e+01 : f32
      %38 = vector.broadcast %cst_25 : f32 to vector<16x1xf32>
      %39 = arith.divf %37, %38 : vector<16x1xf32>
      %40 = vector.broadcast %32 : vector<16x1xf32> to vector<16x32xf32>
      %41 = arith.subf %28, %40 : vector<16x32xf32>
      %cst_26 = arith.constant 9.99999974E-6 : f32
      %42 = vector.broadcast %cst_26 : f32 to vector<16x1xf32>
      %43 = arith.addf %39, %42 : vector<16x1xf32>
      %44 = math.rsqrt %43 : vector<16x1xf32>
      %45 = vector.broadcast %44 : vector<16x1xf32> to vector<16x32xf32>
      %46 = arith.mulf %41, %45 : vector<16x32xf32>
      %c0_27 = arith.constant 0 : index
      %c0_28 = arith.constant 0 : index
      %47 = vector.load %arg8[%c0_27, %c0_28] : memref<1x32xbf16, #tpu.memory_space<vmem>>, vector<1x32xbf16>
      %48 = arith.extf %47 : vector<1x32xbf16> to vector<1x32xf32>
      %49 = vector.broadcast %48 : vector<1x32xf32> to vector<16x32xf32>
      %50 = arith.mulf %46, %49 : vector<16x32xf32>
      %c0_29 = arith.constant 0 : index
      %c0_30 = arith.constant 0 : index
      %51 = vector.load %arg9[%c0_29, %c0_30] : memref<1x32xbf16, #tpu.memory_space<vmem>>, vector<1x32xbf16>
      %52 = arith.extf %51 : vector<1x32xbf16> to vector<1x32xf32>
      %53 = vector.broadcast %52 : vector<1x32xf32> to vector<16x32xf32>
      %54 = arith.addf %50, %53 : vector<16x32xf32>
      %55 = arith.truncf %54 : vector<16x32xf32> to vector<16x32xbf16>
      %c0_31 = arith.constant 0 : index
      %c0_32 = arith.constant 0 : index
      %56 = vector.load %arg10[%c0_31, %c0_32] : memref<16x32xbf16, #tpu.memory_space<vmem>>, vector<16x32xbf16>
      tpu.vector_store %arg10[%c0_31, %c0_32], %55 {strides = array<i32>} : memref<16x32xbf16, #tpu.memory_space<vmem>>, vector<16x32xbf16>,
    } else {
    }
    return
  }
  func.func @transform_0(%arg0: i32, %arg1: i32) -> (i32, i32) {
    %c0_i32 = arith.constant 0 : i32
    %c0_i32_0 = arith.constant 0 : i32
    return %arg0, %c0_i32 : i32, i32
  }
  func.func @transform_1(%arg0: i32, %arg1: i32) -> (i32, i32) {
    %c0_i32 = arith.constant 0 : i32
    %c0_i32_0 = arith.constant 0 : i32
    return %c0_i32, %arg1 : i32, i32
  }
  func.func @transform_2(%arg0: i32, %arg1: i32) -> (i32, i32) {
    %c0_i32 = arith.constant 0 : i32
    %c0_i32_0 = arith.constant 0 : i32
    return %c0_i32, %arg1 : i32, i32
  }
  func.func @transform_3(%arg0: i32, %arg1: i32) -> (i32, i32) {
    %c0_i32 = arith.constant 0 : i32
    %c0_i32_0 = arith.constant 0 : i32
    return %arg1, %c0_i32 : i32, i32
  }
  func.func @transform_4(%arg0: i32, %arg1: i32) -> (i32, i32) {
    %c0_i32 = arith.constant 0 : i32
    %c0_i32_0 = arith.constant 0 : i32
    %c0_i32_1 = arith.constant 0 : i32
    return %c0_i32, %c0_i32_0 : i32, i32
  }
  func.func @transform_5(%arg0: i32, %arg1: i32) -> (i32, i32) {
    %c0_i32 = arith.constant 0 : i32
    %c0_i32_0 = arith.constant 0 : i32
    return %arg0, %c0_i32 : i32, i32
  }
  func.func @transform_6(%arg0: i32, %arg1: i32) -> (i32, i32) {
    %c0_i32 = arith.constant 0 : i32
    %c0_i32_0 = arith.constant 0 : i32
    %c0_i32_1 = arith.constant 0 : i32
    return %c0_i32, %c0_i32_0 : i32, i32
  }
  func.func @transform_7(%arg0: i32, %arg1: i32) -> (i32, i32) {
    %c0_i32 = arith.constant 0 : i32
    %c0_i32_0 = arith.constant 0 : i32
    %c0_i32_1 = arith.constant 0 : i32
    return %c0_i32, %c0_i32_0 : i32, i32
  }
  func.func @transform_8(%arg0: i32, %arg1: i32) -> (i32, i32) {
    %c0_i32 = arith.constant 0 : i32
    %c0_i32_0 = arith.constant 0 : i32
    return %arg0, %c0_i32 : i32, i32
  }
}

module attributes {stable_mosaic.version = 11 : i64} {
  func.func @_matmul_kernel(%arg0: i32, %arg1: i32, %arg2: i32, %arg3: memref<16x32xbf16, #tpu.memory_space<vmem>>, %arg4: memref<32x50xbf16, #tpu.memory_space<vmem>>, %arg5: memref<1x50xbf16, #tpu.memory_space<vmem>>, %arg6: memref<16x50xf32, #tpu.memory_space<vmem>>, %arg7: memref<16x50xf32, #tpu.memory_space<vmem>>) attributes {dimension_semantics = [#tpu.dimension_semantics<parallel>, #tpu.dimension_semantics<parallel>, #tpu.dimension_semantics<arbitrary>], iteration_bounds = array<i64: 1, 1, 1>, scalar_prefetch = 0 : i64, scratch_operands = 1 : i64, tpu.core_type = #tpu.core_type<tc>, window_params = [{transform_indices = @transform_0, window_bounds = array<i64: 16, 32>}, {transform_indices = @transform_1, window_bounds = array<i64: 32, 50>}, {transform_indices = @transform_2, window_bounds = array<i64: 1, 50>}, {transform_indices = @transform_3, window_bounds = array<i64: 16, 50>}]} {
    %c0_i32 = arith.constant 0 : i32
    %0 = arith.cmpi eq, %arg2, %c0_i32 : i32
    %1 = arith.extui %0 : i1 to i32
    %c0_i32_0 = arith.constant 0 : i32
    %2 = arith.cmpi ne, %1, %c0_i32_0 : i32
    scf.if %2 {
      %cst_10 = arith.constant 0.000000e+00 : f32
      %12 = vector.broadcast %cst_10 : f32 to vector<16x50xf32>
      %c0_11 = arith.constant 0 : index
      %c0_12 = arith.constant 0 : index
      %13 = vector.load %arg7[%c0_11, %c0_12] : memref<16x50xf32, #tpu.memory_space<vmem>>, vector<16x50xf32>
      tpu.vector_store %arg7[%c0_11, %c0_12], %12 {strides = array<i32>} : memref<16x50xf32, #tpu.memory_space<vmem>>, vector<16x50xf32>,
    } else {
    }
    %c0 = arith.constant 0 : index
    %c0_1 = arith.constant 0 : index
    %3 = vector.load %arg7[%c0, %c0_1] : memref<16x50xf32, #tpu.memory_space<vmem>>, vector<16x50xf32>
    %c0_2 = arith.constant 0 : index
    %c0_3 = arith.constant 0 : index
    %4 = vector.load %arg3[%c0_2, %c0_3] : memref<16x32xbf16, #tpu.memory_space<vmem>>, vector<16x32xbf16>
    %c0_4 = arith.constant 0 : index
    %c0_5 = arith.constant 0 : index
    %5 = vector.load %arg4[%c0_4, %c0_5] : memref<32x50xbf16, #tpu.memory_space<vmem>>, vector<32x50xbf16>
    %cst = arith.constant dense<0.000000e+00> : vector<16x50xf32>
    %6 = tpu.matmul %4, %5, %cst {dimension_numbers = #tpu.dot_dimension_numbers<[1], [0], [0], [1], [0, 0, 1, 1], [], []>} : vector<16x32xbf16>, vector<32x50xbf16>, vector<16x50xf32> -> vector<16x50xf32>
    %7 = arith.addf %3, %6 : vector<16x50xf32>
    %c0_6 = arith.constant 0 : index
    %c0_7 = arith.constant 0 : index
    %8 = vector.load %arg7[%c0_6, %c0_7] : memref<16x50xf32, #tpu.memory_space<vmem>>, vector<16x50xf32>
    tpu.vector_store %arg7[%c0_6, %c0_7], %7 {strides = array<i32>} : memref<16x50xf32, #tpu.memory_space<vmem>>, vector<16x50xf32>,
    %c0_i32_8 = arith.constant 0 : i32
    %9 = arith.cmpi eq, %arg2, %c0_i32_8 : i32
    %10 = arith.extui %9 : i1 to i32
    %c0_i32_9 = arith.constant 0 : i32
    %11 = arith.cmpi ne, %10, %c0_i32_9 : i32
    scf.if %11 {
      %c0_10 = arith.constant 0 : index
      %c0_11 = arith.constant 0 : index
      %12 = vector.load %arg7[%c0_10, %c0_11] : memref<16x50xf32, #tpu.memory_space<vmem>>, vector<16x50xf32>
      %c0_12 = arith.constant 0 : index
      %c0_13 = arith.constant 0 : index
      %13 = vector.load %arg5[%c0_12, %c0_13] : memref<1x50xbf16, #tpu.memory_space<vmem>>, vector<1x50xbf16>
      %14 = arith.extf %13 : vector<1x50xbf16> to vector<1x50xf32>
      %15 = vector.broadcast %14 : vector<1x50xf32> to vector<16x50xf32>
      %16 = arith.addf %12, %15 : vector<16x50xf32>
      %c0_14 = arith.constant 0 : index
      %c0_15 = arith.constant 0 : index
      %17 = vector.load %arg6[%c0_14, %c0_15] : memref<16x50xf32, #tpu.memory_space<vmem>>, vector<16x50xf32>
      tpu.vector_store %arg6[%c0_14, %c0_15], %16 {strides = array<i32>} : memref<16x50xf32, #tpu.memory_space<vmem>>, vector<16x50xf32>,
    } else {
    }
    return
  }
  func.func @transform_0(%arg0: i32, %arg1: i32, %arg2: i32) -> (i32, i32) {
    %c0_i32 = arith.constant 0 : i32
    return %arg0, %arg2 : i32, i32
  }
  func.func @transform_1(%arg0: i32, %arg1: i32, %arg2: i32) -> (i32, i32) {
    %c0_i32 = arith.constant 0 : i32
    return %arg2, %arg1 : i32, i32
  }
  func.func @transform_2(%arg0: i32, %arg1: i32, %arg2: i32) -> (i32, i32) {
    %c0_i32 = arith.constant 0 : i32
    %c0_i32_0 = arith.constant 0 : i32
    return %c0_i32, %arg1 : i32, i32
  }
  func.func @transform_3(%arg0: i32, %arg1: i32, %arg2: i32) -> (i32, i32) {
    %c0_i32 = arith.constant 0 : i32
    return %arg0, %arg1 : i32, i32
  }
}

module attributes {stable_mosaic.version = 11 : i64} {
  func.func @_matmul_kernel(%arg0: i32, %arg1: i32, %arg2: i32, %arg3: memref<16x32xbf16, #tpu.memory_space<vmem>>, %arg4: memref<32x64xbf16, #tpu.memory_space<vmem>>, %arg5: memref<1x64xbf16, #tpu.memory_space<vmem>>, %arg6: memref<16x64xbf16, #tpu.memory_space<vmem>>, %arg7: memref<16x64xf32, #tpu.memory_space<vmem>>) attributes {dimension_semantics = [#tpu.dimension_semantics<parallel>, #tpu.dimension_semantics<parallel>, #tpu.dimension_semantics<arbitrary>], iteration_bounds = array<i64: 1, 1, 1>, scalar_prefetch = 0 : i64, scratch_operands = 1 : i64, tpu.core_type = #tpu.core_type<tc>, window_params = [{transform_indices = @transform_0, window_bounds = array<i64: 16, 32>}, {transform_indices = @transform_1, window_bounds = array<i64: 32, 64>}, {transform_indices = @transform_2, window_bounds = array<i64: 1, 64>}, {transform_indices = @transform_3, window_bounds = array<i64: 16, 64>}]} {
    %c0_i32 = arith.constant 0 : i32
    %0 = arith.cmpi eq, %arg2, %c0_i32 : i32
    %1 = arith.extui %0 : i1 to i32
    %c0_i32_0 = arith.constant 0 : i32
    %2 = arith.cmpi ne, %1, %c0_i32_0 : i32
    scf.if %2 {
      %cst_10 = arith.constant 0.000000e+00 : f32
      %12 = vector.broadcast %cst_10 : f32 to vector<16x64xf32>
      %c0_11 = arith.constant 0 : index
      %c0_12 = arith.constant 0 : index
      %13 = vector.load %arg7[%c0_11, %c0_12] : memref<16x64xf32, #tpu.memory_space<vmem>>, vector<16x64xf32>
      tpu.vector_store %arg7[%c0_11, %c0_12], %12 {strides = array<i32>} : memref<16x64xf32, #tpu.memory_space<vmem>>, vector<16x64xf32>,
    } else {
    }
    %c0 = arith.constant 0 : index
    %c0_1 = arith.constant 0 : index
    %3 = vector.load %arg7[%c0, %c0_1] : memref<16x64xf32, #tpu.memory_space<vmem>>, vector<16x64xf32>
    %c0_2 = arith.constant 0 : index
    %c0_3 = arith.constant 0 : index
    %4 = vector.load %arg3[%c0_2, %c0_3] : memref<16x32xbf16, #tpu.memory_space<vmem>>, vector<16x32xbf16>
    %c0_4 = arith.constant 0 : index
    %c0_5 = arith.constant 0 : index
    %5 = vector.load %arg4[%c0_4, %c0_5] : memref<32x64xbf16, #tpu.memory_space<vmem>>, vector<32x64xbf16>
    %cst = arith.constant dense<0.000000e+00> : vector<16x64xf32>
    %6 = tpu.matmul %4, %5, %cst {dimension_numbers = #tpu.dot_dimension_numbers<[1], [0], [0], [1], [0, 0, 1, 1], [], []>} : vector<16x32xbf16>, vector<32x64xbf16>, vector<16x64xf32> -> vector<16x64xf32>
    %7 = arith.addf %3, %6 : vector<16x64xf32>
    %c0_6 = arith.constant 0 : index
    %c0_7 = arith.constant 0 : index
    %8 = vector.load %arg7[%c0_6, %c0_7] : memref<16x64xf32, #tpu.memory_space<vmem>>, vector<16x64xf32>
    tpu.vector_store %arg7[%c0_6, %c0_7], %7 {strides = array<i32>} : memref<16x64xf32, #tpu.memory_space<vmem>>, vector<16x64xf32>,
    %c0_i32_8 = arith.constant 0 : i32
    %9 = arith.cmpi eq, %arg2, %c0_i32_8 : i32
    %10 = arith.extui %9 : i1 to i32
    %c0_i32_9 = arith.constant 0 : i32
    %11 = arith.cmpi ne, %10, %c0_i32_9 : i32
    scf.if %11 {
      %c0_10 = arith.constant 0 : index
      %c0_11 = arith.constant 0 : index
      %12 = vector.load %arg7[%c0_10, %c0_11] : memref<16x64xf32, #tpu.memory_space<vmem>>, vector<16x64xf32>
      %c0_12 = arith.constant 0 : index
      %c0_13 = arith.constant 0 : index
      %13 = vector.load %arg5[%c0_12, %c0_13] : memref<1x64xbf16, #tpu.memory_space<vmem>>, vector<1x64xbf16>
      %14 = arith.extf %13 : vector<1x64xbf16> to vector<1x64xf32>
      %15 = vector.broadcast %14 : vector<1x64xf32> to vector<16x64xf32>
      %16 = arith.addf %12, %15 : vector<16x64xf32>
      %17 = arith.truncf %16 : vector<16x64xf32> to vector<16x64xbf16>
      %c0_14 = arith.constant 0 : index
      %c0_15 = arith.constant 0 : index
      %18 = vector.load %arg6[%c0_14, %c0_15] : memref<16x64xbf16, #tpu.memory_space<vmem>>, vector<16x64xbf16>
      tpu.vector_store %arg6[%c0_14, %c0_15], %17 {strides = array<i32>} : memref<16x64xbf16, #tpu.memory_space<vmem>>, vector<16x64xbf16>,
    } else {
    }
    return
  }
  func.func @transform_0(%arg0: i32, %arg1: i32, %arg2: i32) -> (i32, i32) {
    %c0_i32 = arith.constant 0 : i32
    return %arg0, %arg2 : i32, i32
  }
  func.func @transform_1(%arg0: i32, %arg1: i32, %arg2: i32) -> (i32, i32) {
    %c0_i32 = arith.constant 0 : i32
    return %arg2, %arg1 : i32, i32
  }
  func.func @transform_2(%arg0: i32, %arg1: i32, %arg2: i32) -> (i32, i32) {
    %c0_i32 = arith.constant 0 : i32
    %c0_i32_0 = arith.constant 0 : i32
    return %c0_i32, %arg1 : i32, i32
  }
  func.func @transform_3(%arg0: i32, %arg1: i32, %arg2: i32) -> (i32, i32) {
    %c0_i32 = arith.constant 0 : i32
    return %arg0, %arg1 : i32, i32
  }
}

</mosaic_0001>

<bundles_post_ra>
// kernel: gpt2_forward.17
= control target key start
LH: loop header
LB: loop body
LE: loop exit
PB: predicated region body
PF: predicated region fallthrough
CT: control target
= control target key end

     0   :  { %vm19_vm0 = vcmask 785408   ;;  %v149_v0 = vmov 0.0   ;;  %vm150_vm1 = vmmov 0   ;;  %vm47_vm2 = vcmask 261120   ;;  %s193_s1 = inlined_call_operand.vmem [shape: bf16[32,96], index: 1, kind: input, shape index: {}]   ;;  %s194_s0 = inlined_call_operand.vmem [shape: bf16[16,32], index: 0, kind: input, shape index: {}]   ;;  %s195_s2 = inlined_call_operand.vmem [shape: bf16[1,96], index: 2, kind: input, shape index: {}]   ;;  %s196_s3 = inlined_call_operand.vmem [shape: bf16[16,96], index: 3, kind: output, shape index: {}]  }
   0x1   :  { %136 = vmatprep.subr.bf16.mxu0 %v149_v0  ;;  %v146_v1 = vld [vmem:[%s193_s1] sm:$0xff]   ;;  %140 = vmatprep.mubr.msk.bf16.mxu0 %vm150_vm1, %v149_v0  ;;  %20 = vst.msk [vmem:[#allocation2] sm:$0xff] %vm19_vm0, %v149_v0  ;;  %21 = vst.msk [vmem:[#allocation2 + $0x8] sm:$0xff] %vm19_vm0, %v149_v0  ;;  %v147_v2 = vld [vmem:[%s193_s1 + $0x8] sm:$0xff]   ;;  %v104_v4 = vlaneseq  ;;  %vm118_vm3 = vcmask 781312  }
   0x2   :  { %137 = vmatpush3.bf16.msra.mxu0 %v146_v1  ;;  %v148_v3 = vld [vmem:[%s194_s0] sm:$0xff]  }
   0x3   :  { %138 = vmatprep.subr.bf16.mxu0 %v149_v0  ;;  %v105_v6 = vshrl.u32 %v104_v4, 7  ;;  %v102_v8 = vld [vmem:[%s195_s2] sm:$0x1] }
   0x4   :  { %v103_v13 = vunpack.c.l.bf16 %v102_v8 }
   0x5   :  { %v106_v14 = vsub.s32 0, %v105_v6 }
   0x6   :  { %139 = vmatpush3.bf16.msra.mxu0 %v147_v2 }
   0x7   :  { %v107_v17 = vrot.slane %v103_v13, %v106_v14 }
   0x8   :  { %v22_v5 = vld [vmem:[#allocation2] sm:$0xff]  ;;  %v23_v9 = vld [vmem:[#allocation2 + $0x8] sm:$0xff] }
   0x9   :  { %141 = vmatmul.mubr.msk.bf16.vlgmr.msra.gmra.mrb[0].mxu0 %vm47_vm2, %v148_v3 }
  0xdc   :  { %v85_v7 = vpop.f32.mrb[0].mxu0 }
  0xdd   :  { %v92_v10 = vadd.f32 %v85_v7, %v22_v5  ;;  %v142_v11 = vpop.f32.mrb[1].mxu0 }
  0xde   :  { %v88_v12 = vpop.f32.mrb[2].mxu0 }
  0xdf   :  { %95 = vst.msk [vmem:[#allocation2] sm:$0xff] %vm19_vm0, %v92_v10  ;;  %v93_v15 = vadd.f32 %v88_v12, %v23_v9  ;;  %v143_v16 = vpop.f32.mrb[3].mxu0 }
  0xe1   :  { %96 = vst.msk [vmem:[#allocation2 + $0x8] sm:$0xff] %vm19_vm0, %v93_v15 }
  0xe6   :  { %v100_v18 = vld [vmem:[#allocation2] sm:$0xff] }
  0xe7   :  { %v108_v19 = vadd.f32 %v107_v17, %v100_v18 }
  0xe8   :  { %v101_v20 = vld [vmem:[#allocation2 + $0x8] sm:$0xff] }
  0xe9   :  { %v131_v21 = vpack.c.bf16 %v108_v19, %v108_v19  ;;  %v109_v22 = vadd.f32 %v107_v17, %v101_v20 }
  0xeb   :  { %119 = vst.msk [vmem:[%s196_s3] sm:$0xf] %vm118_vm3, %v131_v21  ;;  %v132_v23 = vpack.c.bf16 %v109_v22, %v109_v22 }
  0xed   :  { %120 = vst.msk [vmem:[%s196_s3 + $0x4] sm:$0xf] %vm118_vm3, %v132_v23 }

// kernel: gpt2_forward.18
= control target key start
LH: loop header
LB: loop body
LE: loop exit
PB: predicated region body
PF: predicated region fallthrough
CT: control target
= control target key end

     0   :  { %s646_s12 = smov 0   ;;  %s648_s13 = smov 0   ;;  %s714_s0 = inlined_call_operand.vmem [shape: bf16[2,4,8,8], index: 0, kind: input, shape index: {}]   ;;  %s715_s1 = inlined_call_operand.vmem [shape: bf16[2,4,8,8], index: 1, kind: input, shape index: {}]   ;;  %s716_s2 = inlined_call_operand.vmem [shape: bf16[2,4,8,8], index: 2, kind: input, shape index: {}]   ;;  %s717_s3 = inlined_call_operand.vmem [shape: bf16[2,4,8,8], index: 3, kind: output, shape index: {}]  }
   0x1   :  { %s650_s14 = smov 0   ;;  %s652_s15 = smov 0  }
   0x2   :  { %s654_s16 = smov 0  }
   0x3 LB: > { %s22_s17 = sadd.s32 1, %s614_s14  ;;  %s25_s18 = sadd.s32 1, %s618_s15  ;;  %s622_s16 = sphi %s654_s16, %s13_s16   ;;  %s618_s15 = sphi %s652_s15, %s721_s15   ;;  %s614_s14 = sphi %s650_s14, %s720_s14   ;;  %s610_s13 = sphi %s648_s13, %s719_s13   ;;  %s606_s12 = sphi %s646_s12, %s718_s12  }
   0x4   : > { %p23_p0 = scmp.ge.s32.totalorder %s22_s17, 4  ;;  %p509_p1 = scmp.ge.s32.totalorder %s622_s16, 1 }
   0x5   : > { %p186_p2 = scmp.lt.s32.totalorder %s622_s16, 9 }
   0x6   : > { %s723_s17 = smov (%p23_p0, %s22_s17), 0  ;;  %s725_s18 = smov (!%p23_p0, %s25_s18), %s618_s15 }
   0x7   : > { %p187_p3 = pnand %p509_p1, %p186_p2  ;;  %p27_p4 = scmp.ge.s32.totalorder %s725_s18, 2 }
   0x8   : > { %p232_p5 = scmp.lt.s32.totalorder (!%p187_p3), %s610_s13, 1  ;;  %p234_p6 = scmp.lt.s32.totalorder (!%p187_p3), %s606_s12, 3  ;;  %v624_v0 = vmov (!%p187_p3), 0.0   ;;  %vm625_vm0 = vmmov (!%p187_p3), 0   ;;  %vm268_vm1 = vcmask (!%p187_p3), 64512   ;;  %v315_v4 = vlaneseq (!%p187_p3) }
   0x9   : > { %s727_s18 = smov (%p27_p4, %s725_s18), 0  ;;  %190 = sbr.rel (%p187_p3) target bundleno = 774 (0x306), region = 32 }
   0xa   : > { %526 = vmatprep.subr.bf16.mxu0 (!%p187_p3), %v624_v0  ;;  %528 = vmatprep.mubr.msk.bf16.mxu0 (!%p187_p3), %vm625_vm0, %v624_v0  ;;  %v316_v5 = vshrl.u32 (!%p187_p3), %v315_v4, 7  ;;  %v318_v6 = vand.u32 (!%p187_p3), 127, %v315_v4  ;;  %vm336_vm3 = vcmask (!%p187_p3), 1043456   ;;  %vm381_vm4 = vcmask (!%p187_p3), 60416  }
   0xb   : > { %532 = vmatprep.subr.bf16.mxu1 (!%p187_p3), %v624_v0  ;;  %534 = vmatprep.mubr.msk.bf16.mxu1 (!%p187_p3), %vm625_vm0, %v624_v0 }
   0xc   : > { %vm319_vm2 = vcmp.le.s32.totalorder (!%p187_p3), %v318_v6, %v316_v5 }
  0x10   : > { %s729_s13 = smov (!%p232_p5, %s610_s13), 1  ;;  %s731_s12 = smov (!%p234_p6, %s606_s12), 3 }
  0x11   : > { %s510_s19 = sshll.u32 %s729_s13, 2 }
  0x12   : > { %s237_s20 = sadd.s32 %s510_s19, %s731_s12 }
  0x13   : > { %s676_s21 = sshll.u32 %s237_s20, 2 }
  0x14   : > { %s247_s24 = scalar_lea.vmem %s715_s1, %s676_s21  ;;  %s239_s27 = scalar_lea.vmem %s714_s0, %s676_s21 }
  0x15   : > { %v266_v1 = vld [vmem:[%s247_s24] sm:$0xf]  ;;  %s255_s30 = scalar_lea.vmem %s716_s2, %s676_s21  ;;  %s263_s6 = scalar_lea.vmem %s717_s3, %s676_s21 }
  0x16   : > { %v273_v2 = vsel %vm268_vm1, %v266_v1, 0  ;;  %v265_v3 = vld [vmem:[%s239_s27] sm:$0xf] }
  0x17   : > { %527 = vmatpush3.bf16.xpose.msra.mxu0 %v273_v2  ;;  %v267_v18 = vld [vmem:[%s255_s30] sm:$0xf] }
  0x18   : > { %v338_v19 = vsel %vm336_vm3, %v267_v18, 0 }
  0x19   : > { %533 = vmatpush3.bf16.msra.mxu1 %v338_v19 }
  0x1e   : > { %529 = vmatmul.mubr.msk.bf16.vlgmr.msra.gmra.mrb[0].mxu0 %vm268_vm1, %v265_v3 }
  0xf1   : > { %v309_v7 = vpop.f32.mrb[0].mxu0 }
  0xf2   : > { %v320_v8 = vsel %vm319_vm2, %v309_v7, -1e+30  ;;  %v530_v9 = vpop.f32.mrb[1].mxu0 }
  0xf3   : > { %v312_v10 = vpop.f32.mrb[2].mxu0  ;;  %v321_v11 = vsel %vm268_vm1, %v320_v8, -inf }
  0xf4   : > { %322 = vmax.xlane.f32.xlu0 %v321_v11  ;;  %v531_v12 = vpop.f32.mrb[3].mxu0 }
 0x181   : > { %v323_v13 = vpop.xlane.xlu0 %322 }
 0x182   : > { %v324_v14 = vsub.f32 %v320_v8, %v323_v13 }
 0x184   : > { %v325_v15 = vmul.f32 1.442695, %v324_v14 }
 0x186   : > { %580 = vpow2.f32 %v325_v15 }
 0x190   : > { %v581_v16 = vpop.eup %580 }
 0x191   : > { %v327_v17 = vsel %vm268_vm1, %v581_v16, 0.0 }
 0x192   : > { %328 = vadd.xlane.f32.xlu0 %v327_v17 }
 0x21f   : > { %v329_v20 = vpop.xlane.xlu0 %328 }
 0x220   : > { %582 = vrcp.f32 %v329_v20 }
 0x22a   : > { %v583_v21 = vpop.eup %582 }
 0x22b   : > { %v331_v22 = vmul.f32 %v583_v21, %v581_v16 }
 0x22d   : > { %v332_v23 = vpack.c.bf16 %v331_v22, %v331_v22 }
 0x22f   : > { %535 = vmatmul.mubr.msk.bf16.vlgmr.msra.gmra.mrb[0].mxu1 %vm268_vm1, %v332_v23 }
 0x302   : > { %v374_v24 = vpop.f32.mrb[0].mxu1 }
 0x303   : > { %v380_v25 = vpack.c.bf16 %v374_v24, %v374_v24  ;;  %v536_v26 = vpop.f32.mrb[1].mxu1 }
 0x304   : > { %v377_v27 = vpop.f32.mrb[2].mxu1 }
 0x305   : > { %382 = vst.msk [vmem:[%s263_s6] sm:$0xf] %vm381_vm4, %v380_v25  ;;  %v537_v28 = vpop.f32.mrb[3].mxu1 }
 0x306 PF: > { %s13_s16 = sadd.s32 1, %s622_s16   ;;  %s718_s12 = smov %s614_s14 }
 0x307   : > { %p10_p7 = scmp.ge.s32.totalorder %s13_s16, 10   ;;  %s719_s13 = smov %s618_s15 }
 0x308   : > { %s720_s14 = smov %s723_s17  ;;  %s721_s15 = smov %s727_s18 }
 0x309   :  { %12 = sbr.rel (!%p10_p7) target bundleno = 3 (0x3), region = 68 }

// kernel: gpt2_forward.20
= control target key start
LH: loop header
LB: loop body
LE: loop exit
PB: predicated region body
PF: predicated region fallthrough
CT: control target
= control target key end

     0   :  { %vm19_vm0 = vcmask 261120   ;;  %v148_v0 = vmov 0.0   ;;  %vm149_vm1 = vmmov 0   ;;  %v103_v4 = vlaneseq  ;;  %s193_s1 = inlined_call_operand.vmem [shape: bf16[32,32], index: 1, kind: input, shape index: {}]   ;;  %s194_s0 = inlined_call_operand.vmem [shape: bf16[16,32], index: 0, kind: input, shape index: {}]   ;;  %s195_s2 = inlined_call_operand.vmem [shape: bf16[1,32], index: 2, kind: input, shape index: {}]   ;;  %s196_s3 = inlined_call_operand.vmem [shape: bf16[16,32], index: 3, kind: output, shape index: {}]  }
   0x1   :  { %135 = vmatprep.subr.bf16.mxu0 %v148_v0  ;;  %v145_v1 = vld [vmem:[%s193_s1] sm:$0xff]   ;;  %139 = vmatprep.mubr.msk.bf16.mxu0 %vm149_vm1, %v148_v0  ;;  %20 = vst.msk [vmem:[#allocation2] sm:$0xff] %vm19_vm0, %v148_v0  ;;  %21 = vst.msk [vmem:[#allocation2 + $0x8] sm:$0xff] %vm19_vm0, %v148_v0  ;;  %v146_v2 = vld [vmem:[%s193_s1 + $0x8] sm:$0xff]   ;;  %vm117_vm2 = vcmask 257024  }
   0x2   :  { %136 = vmatpush3.bf16.msra.mxu0 %v145_v1  ;;  %v147_v3 = vld [vmem:[%s194_s0] sm:$0xff]   ;;  %v104_v6 = vshrl.u32 %v103_v4, 7 }
   0x3   :  { %137 = vmatprep.subr.bf16.mxu0 %v148_v0  ;;  %v101_v8 = vld [vmem:[%s195_s2] sm:$0x1] }
   0x4   :  { %v102_v13 = vunpack.c.l.bf16 %v101_v8  ;;  %v105_v14 = vsub.s32 0, %v104_v6 }
   0x6   :  { %138 = vmatpush3.bf16.msra.mxu0 %v146_v2  ;;  %v106_v17 = vrot.slane %v102_v13, %v105_v14 }
   0x8   :  { %v22_v5 = vld [vmem:[#allocation2] sm:$0xff]  ;;  %v23_v9 = vld [vmem:[#allocation2 + $0x8] sm:$0xff] }
   0x9   :  { %140 = vmatmul.mubr.msk.bf16.vlgmr.msra.gmra.mrb[0].mxu0 %vm19_vm0, %v147_v3 }
  0xdc   :  { %v85_v7 = vpop.f32.mrb[0].mxu0 }
  0xdd   :  { %v92_v10 = vadd.f32 %v85_v7, %v22_v5  ;;  %v141_v11 = vpop.f32.mrb[1].mxu0 }
  0xde   :  { %v88_v12 = vpop.f32.mrb[2].mxu0 }
  0xdf   :  { %94 = vst.msk [vmem:[#allocation2] sm:$0xff] %vm19_vm0, %v92_v10  ;;  %v93_v15 = vadd.f32 %v88_v12, %v23_v9  ;;  %v142_v16 = vpop.f32.mrb[3].mxu0 }
  0xe1   :  { %95 = vst.msk [vmem:[#allocation2 + $0x8] sm:$0xff] %vm19_vm0, %v93_v15 }
  0xe6   :  { %v99_v18 = vld [vmem:[#allocation2] sm:$0xff] }
  0xe7   :  { %v107_v19 = vadd.f32 %v106_v17, %v99_v18 }
  0xe8   :  { %v100_v20 = vld [vmem:[#allocation2 + $0x8] sm:$0xff] }
  0xe9   :  { %v130_v21 = vpack.c.bf16 %v107_v19, %v107_v19  ;;  %v108_v22 = vadd.f32 %v106_v17, %v100_v20 }
  0xeb   :  { %118 = vst.msk [vmem:[%s196_s3] sm:$0xf] %vm117_vm2, %v130_v21  ;;  %v131_v23 = vpack.c.bf16 %v108_v22, %v108_v22 }
  0xed   :  { %119 = vst.msk [vmem:[%s196_s3 + $0x4] sm:$0xf] %vm117_vm2, %v131_v23 }

// kernel: gpt2_forward.19
= control target key start
LH: loop header
LB: loop body
LE: loop exit
PB: predicated region body
PF: predicated region fallthrough
CT: control target
= control target key end

     0   :  { %vm28_vm0 = vcmask 261120   ;;  %v214_v0 = vmov 0.0   ;;  %vm215_vm1 = vmmov 0   ;;  %v112_v4 = vlaneseq  ;;  %s287_s1 = inlined_call_operand.vmem [shape: bf16[32,32], index: 1, kind: input, shape index: {}]   ;;  %s288_s0 = inlined_call_operand.vmem [shape: bf16[16,32], index: 0, kind: input, shape index: {}]   ;;  %s289_s2 = inlined_call_operand.vmem [shape: bf16[1,32], index: 2, kind: input, shape index: {}]   ;;  %s290_s3 = inlined_call_operand.vmem [shape: bf16[16,32], index: 3, kind: input, shape index: {}]   ;;  %s291_s4 = inlined_call_operand.vmem [shape: bf16[1,32], index: 4, kind: input, shape index: {}]   ;;  %s292_s5 = inlined_call_operand.vmem [shape: bf16[1,32], index: 5, kind: input, shape index: {}]   ;;  %s293_s6 = inlined_call_operand.vmem [shape: bf16[16,32], index: 6, kind: output, shape index: {}]  }
   0x1   :  { %197 = vmatprep.subr.bf16.mxu0 %v214_v0  ;;  %v207_v1 = vld [vmem:[%s287_s1] sm:$0xff]   ;;  %201 = vmatprep.mubr.msk.bf16.mxu0 %vm215_vm1, %v214_v0  ;;  %29 = vst.msk [vmem:[#allocation2] sm:$0xff] %vm28_vm0, %v214_v0  ;;  %30 = vst.msk [vmem:[#allocation2 + $0x8] sm:$0xff] %vm28_vm0, %v214_v0  ;;  %v208_v2 = vld [vmem:[%s287_s1 + $0x8] sm:$0xff]   ;;  %vm175_vm2 = vcmask 257024  }
   0x2   :  { %198 = vmatpush3.bf16.msra.mxu0 %v207_v1  ;;  %v209_v3 = vld [vmem:[%s288_s0] sm:$0xff]   ;;  %v113_v6 = vshrl.u32 %v112_v4, 7 }
   0x3   :  { %199 = vmatprep.subr.bf16.mxu0 %v214_v0  ;;  %v110_v9 = vld [vmem:[%s289_s2] sm:$0x1] }
   0x4   :  { %v111_v15 = vunpack.c.l.bf16 %v110_v9  ;;  %v114_v16 = vsub.s32 0, %v113_v6  ;;  %v191_v17 = vld [vmem:[%s290_s3] sm:$0xff]  }
   0x5   :  { %v192_v19 = vunpack.c.l.bf16 %v191_v17  ;;  %v193_v22 = vunpack.c.h.bf16 %v191_v17  ;;  %v151_v44 = vld [vmem:[%s291_s4] sm:$0x1] }
   0x6   :  { %200 = vmatpush3.bf16.msra.mxu0 %v208_v2  ;;  %v115_v18 = vrot.slane %v111_v15, %v114_v16  ;;  %v159_v46 = vld [vmem:[%s292_s5] sm:$0x1]  ;;  %v152_v47 = vunpack.c.l.bf16 %v151_v44 }
   0x7   :  { %v160_v48 = vunpack.c.l.bf16 %v159_v46 }
   0x8   :  { %v31_v5 = vld [vmem:[#allocation2] sm:$0xff]  ;;  %v32_v8 = vld [vmem:[#allocation2 + $0x8] sm:$0xff]  ;;  %v156_v49 = vrot.slane %v152_v47, %v114_v16 }
   0x9   :  { %202 = vmatmul.mubr.msk.bf16.vlgmr.msra.gmra.mrb[0].mxu0 %vm28_vm0, %v209_v3  ;;  %v164_v51 = vrot.slane %v160_v48, %v114_v16 }
  0xdc   :  { %v94_v7 = vpop.f32.mrb[0].mxu0 }
  0xdd   :  { %v101_v10 = vadd.f32 %v94_v7, %v31_v5  ;;  %v203_v11 = vpop.f32.mrb[1].mxu0 }
  0xde   :  { %v97_v12 = vpop.f32.mrb[2].mxu0 }
  0xdf   :  { %103 = vst.msk [vmem:[#allocation2] sm:$0xff] %vm28_vm0, %v101_v10  ;;  %v102_v13 = vadd.f32 %v97_v12, %v32_v8  ;;  %v204_v14 = vpop.f32.mrb[3].mxu0 }
  0xe1   :  { %104 = vst.msk [vmem:[#allocation2 + $0x8] sm:$0xff] %vm28_vm0, %v102_v13 }
  0xe6   :  { %v108_v20 = vld [vmem:[#allocation2] sm:$0xff] }
  0xe7   :  { %v116_v21 = vadd.f32 %v115_v18, %v108_v20 }
  0xe8   :  { %v109_v23 = vld [vmem:[#allocation2 + $0x8] sm:$0xff] }
  0xe9   :  { %v122_v24 = vadd.f32 %v192_v19, %v116_v21  ;;  %v117_v25 = vadd.f32 %v115_v18, %v109_v23 }
  0xeb   :  { %v124_v26 = vsel %vm28_vm0, %v122_v24, 0.0  ;;  %v123_v27 = vadd.f32 %v193_v22, %v117_v25 }
  0xec   :  { %125 = vadd.xlane.f32.xlu0 %v124_v26 }
  0xed   :  { %v127_v28 = vsel %vm28_vm0, %v123_v27, 0.0 }
  0xf0   :  { %128 = vadd.xlane.f32.xlu0 %v127_v28 }
 0x179   :  { %v126_v29 = vpop.xlane.xlu0 %125 }
 0x17a   :  { %v131_v30 = vmul.f32 0.03125, %v126_v29 }
 0x17c   :  { %v133_v31 = vsub.f32 %v122_v24, %v131_v30 }
 0x17d   :  { %v129_v32 = vpop.xlane.xlu0 %128 }
 0x17e   :  { %v132_v33 = vmul.f32 0.03125, %v129_v32  ;;  %v135_v34 = vmul.f32 %v133_v31, %v133_v31 }
 0x180   :  { %v134_v35 = vsub.f32 %v123_v27, %v132_v33  ;;  %v137_v36 = vsel %vm28_vm0, %v135_v34, 0.0 }
 0x181   :  { %138 = vadd.xlane.f32.xlu1 %v137_v36 }
 0x182   :  { %v136_v37 = vmul.f32 %v134_v35, %v134_v35 }
 0x184   :  { %v140_v38 = vsel %vm28_vm0, %v136_v37, 0.0 }
 0x185   :  { %141 = vadd.xlane.f32.xlu1 %v140_v38 }
 0x20e   :  { %v139_v39 = vpop.xlane.xlu1 %138 }
 0x20f   :  { %v143_v40 = vmul.f32 0.03125, %v139_v39 }
 0x211   :  { %v145_v41 = vadd.f32 1e-05, %v143_v40 }
 0x212   :  { %v142_v42 = vpop.xlane.xlu1 %141 }
 0x213   :  { %210 = vrsqrt.f32 %v145_v41  ;;  %v144_v43 = vmul.f32 0.03125, %v142_v42 }
 0x215   :  { %v146_v45 = vadd.f32 1e-05, %v144_v43 }
 0x217   :  { %212 = vrsqrt.f32 %v146_v45 }
 0x21d   :  { %v211_v50 = vpop.eup %210 }
 0x21e   :  { %v149_v52 = vmul.f32 %v211_v50, %v133_v31 }
 0x220   :  { %v157_v53 = vmul.f32 %v156_v49, %v149_v52 }
 0x221   :  { %v213_v54 = vpop.eup %212 }
 0x222   :  { %v165_v55 = vadd.f32 %v164_v51, %v157_v53  ;;  %v150_v56 = vmul.f32 %v213_v54, %v134_v35 }
 0x224   :  { %v188_v57 = vpack.c.bf16 %v165_v55, %v165_v55  ;;  %v158_v58 = vmul.f32 %v156_v49, %v150_v56 }
 0x226   :  { %176 = vst.msk [vmem:[%s293_s6] sm:$0xf] %vm175_vm2, %v188_v57  ;;  %v166_v59 = vadd.f32 %v164_v51, %v158_v58 }
 0x228   :  { %v189_v60 = vpack.c.bf16 %v166_v59, %v166_v59 }
 0x22a   :  { %177 = vst.msk [vmem:[%s293_s6 + $0x4] sm:$0xf] %vm175_vm2, %v189_v60 }

// kernel: gpt2_forward.22
= control target key start
LH: loop header
LB: loop body
LE: loop exit
PB: predicated region body
PF: predicated region fallthrough
CT: control target
= control target key end

     0   :  { %s640_s12 = smov 0   ;;  %s642_s13 = smov 0   ;;  %s708_s0 = inlined_call_operand.vmem [shape: bf16[2,4,8,8], index: 0, kind: input, shape index: {}]   ;;  %s709_s1 = inlined_call_operand.vmem [shape: bf16[2,4,8,8], index: 1, kind: input, shape index: {}]   ;;  %s710_s2 = inlined_call_operand.vmem [shape: bf16[2,4,8,8], index: 2, kind: input, shape index: {}]   ;;  %s711_s3 = inlined_call_operand.vmem [shape: bf16[2,4,8,8], index: 3, kind: output, shape index: {}]  }
   0x1   :  { %s644_s14 = smov 0   ;;  %s646_s15 = smov 0  }
   0x2   :  { %s648_s16 = smov 0  }
   0x3 LB: > { %s22_s17 = sadd.s32 1, %s608_s14  ;;  %s25_s18 = sadd.s32 1, %s612_s15  ;;  %s616_s16 = sphi %s648_s16, %s13_s16   ;;  %s612_s15 = sphi %s646_s15, %s715_s15   ;;  %s608_s14 = sphi %s644_s14, %s714_s14   ;;  %s604_s13 = sphi %s642_s13, %s713_s13   ;;  %s600_s12 = sphi %s640_s12, %s712_s12  }
   0x4   : > { %p23_p0 = scmp.ge.s32.totalorder %s22_s17, 4  ;;  %p503_p1 = scmp.ge.s32.totalorder %s616_s16, 1 }
   0x5   : > { %p186_p2 = scmp.lt.s32.totalorder %s616_s16, 9 }
   0x6   : > { %s717_s17 = smov (%p23_p0, %s22_s17), 0  ;;  %s719_s18 = smov (!%p23_p0, %s25_s18), %s612_s15 }
   0x7   : > { %p187_p3 = pnand %p503_p1, %p186_p2  ;;  %p27_p4 = scmp.ge.s32.totalorder %s719_s18, 2 }
   0x8   : > { %p232_p5 = scmp.lt.s32.totalorder (!%p187_p3), %s604_s13, 1  ;;  %p234_p6 = scmp.lt.s32.totalorder (!%p187_p3), %s600_s12, 3  ;;  %v618_v0 = vmov (!%p187_p3), 0.0   ;;  %vm619_vm0 = vmmov (!%p187_p3), 0   ;;  %vm268_vm1 = vcmask (!%p187_p3), 64512   ;;  %vm330_vm2 = vcmask (!%p187_p3), 1043456  }
   0x9   : > { %s721_s18 = smov (%p27_p4, %s719_s18), 0  ;;  %190 = sbr.rel (%p187_p3) target bundleno = 773 (0x305), region = 32 }
   0xa   : > { %520 = vmatprep.subr.bf16.mxu0 (!%p187_p3), %v618_v0  ;;  %522 = vmatprep.mubr.msk.bf16.mxu0 (!%p187_p3), %vm619_vm0, %v618_v0  ;;  %vm375_vm3 = vcmask (!%p187_p3), 60416  }
   0xb   : > { %526 = vmatprep.subr.bf16.mxu1 (!%p187_p3), %v618_v0  ;;  %528 = vmatprep.mubr.msk.bf16.mxu1 (!%p187_p3), %vm619_vm0, %v618_v0 }
  0x10   : > { %s723_s13 = smov (!%p232_p5, %s604_s13), 1  ;;  %s725_s12 = smov (!%p234_p6, %s600_s12), 3 }
  0x11   : > { %s504_s19 = sshll.u32 %s723_s13, 2 }
  0x12   : > { %s237_s20 = sadd.s32 %s504_s19, %s725_s12 }
  0x13   : > { %s670_s21 = sshll.u32 %s237_s20, 2 }
  0x14   : > { %s247_s24 = scalar_lea.vmem %s709_s1, %s670_s21  ;;  %s239_s27 = scalar_lea.vmem %s708_s0, %s670_s21 }
  0x15   : > { %v266_v1 = vld [vmem:[%s247_s24] sm:$0xf]  ;;  %s255_s30 = scalar_lea.vmem %s710_s2, %s670_s21  ;;  %s263_s6 = scalar_lea.vmem %s711_s3, %s670_s21 }
  0x16   : > { %v273_v2 = vsel %vm268_vm1, %v266_v1, 0  ;;  %v265_v3 = vld [vmem:[%s239_s27] sm:$0xf] }
  0x17   : > { %521 = vmatpush3.bf16.xpose.msra.mxu0 %v273_v2  ;;  %v267_v14 = vld [vmem:[%s255_s30] sm:$0xf] }
  0x18   : > { %v332_v15 = vsel %vm330_vm2, %v267_v14, 0 }
  0x19   : > { %527 = vmatpush3.bf16.msra.mxu1 %v332_v15 }
  0x1e   : > { %523 = vmatmul.mubr.msk.bf16.vlgmr.msra.gmra.mrb[0].mxu0 %vm268_vm1, %v265_v3 }
  0xf1   : > { %v309_v4 = vpop.f32.mrb[0].mxu0 }
  0xf2   : > { %v524_v5 = vpop.f32.mrb[1].mxu0  ;;  %v315_v6 = vsel %vm268_vm1, %v309_v4, -inf }
  0xf3   : > { %316 = vmax.xlane.f32.xlu0 %v315_v6  ;;  %v312_v7 = vpop.f32.mrb[2].mxu0 }
  0xf4   : > { %v525_v8 = vpop.f32.mrb[3].mxu0 }
 0x180   : > { %v317_v9 = vpop.xlane.xlu0 %316 }
 0x181   : > { %v318_v10 = vsub.f32 %v309_v4, %v317_v9 }
 0x183   : > { %v319_v11 = vmul.f32 1.442695, %v318_v10 }
 0x185   : > { %574 = vpow2.f32 %v319_v11 }
 0x18f   : > { %v575_v12 = vpop.eup %574 }
 0x190   : > { %v321_v13 = vsel %vm268_vm1, %v575_v12, 0.0 }
 0x191   : > { %322 = vadd.xlane.f32.xlu0 %v321_v13 }
 0x21e   : > { %v323_v16 = vpop.xlane.xlu0 %322 }
 0x21f   : > { %576 = vrcp.f32 %v323_v16 }
 0x229   : > { %v577_v17 = vpop.eup %576 }
 0x22a   : > { %v325_v18 = vmul.f32 %v577_v17, %v575_v12 }
 0x22c   : > { %v326_v19 = vpack.c.bf16 %v325_v18, %v325_v18 }
 0x22e   : > { %529 = vmatmul.mubr.msk.bf16.vlgmr.msra.gmra.mrb[0].mxu1 %vm268_vm1, %v326_v19 }
 0x301   : > { %v368_v20 = vpop.f32.mrb[0].mxu1 }
 0x302   : > { %v374_v21 = vpack.c.bf16 %v368_v20, %v368_v20  ;;  %v530_v22 = vpop.f32.mrb[1].mxu1 }
 0x303   : > { %v371_v23 = vpop.f32.mrb[2].mxu1 }
 0x304   : > { %376 = vst.msk [vmem:[%s263_s6] sm:$0xf] %vm375_vm3, %v374_v21  ;;  %v531_v24 = vpop.f32.mrb[3].mxu1 }
 0x305 PF: > { %s13_s16 = sadd.s32 1, %s616_s16   ;;  %s712_s12 = smov %s608_s14 }
 0x306   : > { %p10_p7 = scmp.ge.s32.totalorder %s13_s16, 10   ;;  %s713_s13 = smov %s612_s15 }
 0x307   : > { %s714_s14 = smov %s717_s17  ;;  %s715_s15 = smov %s721_s18 }
 0x308   :  { %12 = sbr.rel (!%p10_p7) target bundleno = 3 (0x3), region = 68 }

// kernel: gpt2_forward.33
= control target key start
LH: loop header
LB: loop body
LE: loop exit
PB: predicated region body
PF: predicated region fallthrough
CT: control target
= control target key end

     0   :  { %v176_v1 = vmov 0.0   ;;  %vm177_vm0 = vmmov 0   ;;  %vm20_vm1 = vcmask 408576   ;;  %s231_s0 = inlined_call_operand.vmem [shape: bf16[16,32], index: 0, kind: input, shape index: {}]   ;;  %s232_s1 = inlined_call_operand.vmem [shape: bf16[32,50], index: 1, kind: input, shape index: {}]   ;;  %s233_s2 = inlined_call_operand.vmem [shape: bf16[1,50], index: 2, kind: input, shape index: {}]   ;;  %s234_s3 = inlined_call_operand.hbm [shape: f32[16,50], index: 3, kind: output, shape index: {}]  }
   0x1   :  { %v149_v0 = vld [vmem:[%s232_s1] sm:$0xff]   ;;  %136 = vmatprep.subr.bf16.mxu0 %v176_v1  ;;  %v150_v2 = vld [vmem:[%s232_s1 + $0x8] sm:$0xff]   ;;  %140 = vmatprep.mubr.msk.bf16.mxu0 %vm177_vm0, %v176_v1 }
   0x2   :  { %137 = vmatpush3.bf16.msra.mxu0 %v149_v0 }
   0x3   :  { %138 = vmatprep.subr.bf16.mxu0 %v176_v1 }
   0x4   :  { %8 = vsyncpa [#allocation4], 0  ;;  %21 = vst.msk [vmem:[#allocation2] sm:$0xff] %vm20_vm1, %v176_v1  ;;  %v151_v3 = vld [vmem:[%s231_s0] sm:$0xff]   ;;  %vm48_vm2 = vcmask 261120   ;;  %v105_v4 = vlaneseq  ;;  %s178_s0 = smov [#allocation3]  }
   0x5   :  { %22 = vst.msk [vmem:[#allocation2 + $0x8] sm:$0xff] %vm20_vm1, %v176_v1  ;;  %v103_v9 = vld [vmem:[%s233_s2] sm:$0x1]  ;;  %s118_s19 = sshll.u32 %s178_s0, 4  ;;  %s119_s19 = int_to_ptr.vmem [resolvable:$true] %s118_s19 }
   0x6   :  { %139 = vmatpush3.bf16.msra.mxu0 %v150_v2  ;;  %v106_v6 = vshrl.u32 %v105_v4, 7  ;;  %v104_v15 = vunpack.c.l.bf16 %v103_v9  ;;  %s152_s2 = scalar_lea.vmem %s119_s19, 256  ;;  %p157_p1 = scmp.lt.s32.totalorder %s119_s19, %s119_s19 }
   0x7   :  { %p153_p0 = scmp.ne.s32.totalorder %s119_s19, %s152_s2  ;;  %p158_p2 = scmp.lt.s32.totalorder %s152_s2, %s152_s2 }
   0x8   :  { %v107_v16 = vsub.s32 0, %v106_v6 }
   0x9   :  { %141 = vmatmul.mubr.msk.bf16.vlgmr.msra.gmra.mrb[0].mxu0 %vm48_vm2, %v151_v3  ;;  %p159_p3 = por %p158_p2, %p157_p1 }
   0xa   :  { %v108_v17 = vrot.slane %v104_v15, %v107_v16 }
   0xb   :  { %v23_v5 = vld [vmem:[#allocation2] sm:$0xff]  ;;  %p160_p4 = pnand %p159_p3, %p153_p0 }
   0xc   :  { %v24_v8 = vld [vmem:[#allocation2 + $0x8] sm:$0xff] }
  0xdc   :  { %v86_v7 = vpop.f32.mrb[0].mxu0 }
  0xdd   :  { %v93_v10 = vadd.f32 %v86_v7, %v23_v5  ;;  %v142_v11 = vpop.f32.mrb[1].mxu0 }
  0xde   :  { %v89_v12 = vpop.f32.mrb[2].mxu0 }
  0xdf   :  { %96 = vst.msk [vmem:[#allocation2] sm:$0xff] %vm20_vm1, %v93_v10  ;;  %v94_v13 = vadd.f32 %v89_v12, %v24_v8  ;;  %v143_v14 = vpop.f32.mrb[3].mxu0 }
  0xe1   :  { %97 = vst.msk [vmem:[#allocation2 + $0x8] sm:$0xff] %vm20_vm1, %v94_v13 }
  0xe6   :  { %v101_v18 = vld [vmem:[#allocation2] sm:$0xff] }
  0xe7   :  { %v109_v19 = vadd.f32 %v108_v17, %v101_v18 }
  0xe8   :  { %v102_v20 = vld [vmem:[#allocation2 + $0x8] sm:$0xff] }
  0xe9   :  { %v110_v21 = vadd.f32 %v108_v17, %v102_v20  ;;  %111 = vst.msk [vmem:[#allocation3] sm:$0xff] %vm20_vm1, %v109_v19 }
  0xeb   :  { %112 = vst.msk [vmem:[#allocation3 + $0x8] sm:$0xff] %vm20_vm1, %v110_v21 }
  0xec   :  { %163 = shalt.err (!%p160_p4)
}
  0xed   :  { %s164_s22 = scalar_lea.hbm %s234_s3, 256 }
  0xee   :  { %p165_p5 = scmp.ne.s32.totalorder %s234_s3, %s164_s22  ;;  %p168_p6 = scmp.lt.u32.totalorder %s164_s22, %s234_s3 }
  0xf0   :  { %p170_p7 = pnand %p168_p6, %p165_p5 }
  0xf2   :  { %173 = shalt.err (!%p170_p7)
}
  0xf3   :  { %s179_s27 = smov 128   ;;  %s180_s28 = smov 8  }
  0xf4   :  { %124 = dma.vmem_to_hbm [thread:$0]  %s119_s19, 256, %s234_s3, [#allocation4], %s179_s27, %s179_s27, %s180_s28  }
  0xf5   :  { %174 = dma.done.wait [#allocation4], 256  }
  0xf6   :  { %175 = vsyncadd [#allocation4], 4294967040 }
  0xf7   :  { %128 = vsyncpa [#allocation4], 1 }

// kernel: gpt2_forward.21
= control target key start
LH: loop header
LB: loop body
LE: loop exit
PB: predicated region body
PF: predicated region fallthrough
CT: control target
= control target key end

     0   :  { %vm19_vm0 = vcmask 523264   ;;  %v149_v0 = vmov 0.0   ;;  %vm150_vm1 = vmmov 0   ;;  %vm47_vm2 = vcmask 261120   ;;  %s193_s1 = inlined_call_operand.vmem [shape: bf16[32,64], index: 1, kind: input, shape index: {}]   ;;  %s194_s0 = inlined_call_operand.vmem [shape: bf16[16,32], index: 0, kind: input, shape index: {}]   ;;  %s195_s2 = inlined_call_operand.vmem [shape: bf16[1,64], index: 2, kind: input, shape index: {}]   ;;  %s196_s3 = inlined_call_operand.vmem [shape: bf16[16,64], index: 3, kind: output, shape index: {}]  }
   0x1   :  { %136 = vmatprep.subr.bf16.mxu0 %v149_v0  ;;  %v146_v1 = vld [vmem:[%s193_s1] sm:$0xff]   ;;  %140 = vmatprep.mubr.msk.bf16.mxu0 %vm150_vm1, %v149_v0  ;;  %20 = vst.msk [vmem:[#allocation2] sm:$0xff] %vm19_vm0, %v149_v0  ;;  %21 = vst.msk [vmem:[#allocation2 + $0x8] sm:$0xff] %vm19_vm0, %v149_v0  ;;  %v147_v2 = vld [vmem:[%s193_s1 + $0x8] sm:$0xff]   ;;  %v104_v4 = vlaneseq  ;;  %vm118_vm3 = vcmask 519168  }
   0x2   :  { %137 = vmatpush3.bf16.msra.mxu0 %v146_v1  ;;  %v148_v3 = vld [vmem:[%s194_s0] sm:$0xff]  }
   0x3   :  { %138 = vmatprep.subr.bf16.mxu0 %v149_v0  ;;  %v105_v6 = vshrl.u32 %v104_v4, 7  ;;  %v102_v8 = vld [vmem:[%s195_s2] sm:$0x1] }
   0x4   :  { %v103_v13 = vunpack.c.l.bf16 %v102_v8 }
   0x5   :  { %v106_v14 = vsub.s32 0, %v105_v6 }
   0x6   :  { %139 = vmatpush3.bf16.msra.mxu0 %v147_v2 }
   0x7   :  { %v107_v17 = vrot.slane %v103_v13, %v106_v14 }
   0x8   :  { %v22_v5 = vld [vmem:[#allocation2] sm:$0xff]  ;;  %v23_v9 = vld [vmem:[#allocation2 + $0x8] sm:$0xff] }
   0x9   :  { %141 = vmatmul.mubr.msk.bf16.vlgmr.msra.gmra.mrb[0].mxu0 %vm47_vm2, %v148_v3 }
  0xdc   :  { %v85_v7 = vpop.f32.mrb[0].mxu0 }
  0xdd   :  { %v92_v10 = vadd.f32 %v85_v7, %v22_v5  ;;  %v142_v11 = vpop.f32.mrb[1].mxu0 }
  0xde   :  { %v88_v12 = vpop.f32.mrb[2].mxu0 }
  0xdf   :  { %95 = vst.msk [vmem:[#allocation2] sm:$0xff] %vm19_vm0, %v92_v10  ;;  %v93_v15 = vadd.f32 %v88_v12, %v23_v9  ;;  %v143_v16 = vpop.f32.mrb[3].mxu0 }
  0xe1   :  { %96 = vst.msk [vmem:[#allocation2 + $0x8] sm:$0xff] %vm19_vm0, %v93_v15 }
  0xe6   :  { %v100_v18 = vld [vmem:[#allocation2] sm:$0xff] }
  0xe7   :  { %v108_v19 = vadd.f32 %v107_v17, %v100_v18 }
  0xe8   :  { %v101_v20 = vld [vmem:[#allocation2 + $0x8] sm:$0xff] }
  0xe9   :  { %v131_v21 = vpack.c.bf16 %v108_v19, %v108_v19  ;;  %v109_v22 = vadd.f32 %v107_v17, %v101_v20 }
  0xeb   :  { %119 = vst.msk [vmem:[%s196_s3] sm:$0xf] %vm118_vm3, %v131_v21  ;;  %v132_v23 = vpack.c.bf16 %v109_v22, %v109_v22 }
  0xed   :  { %120 = vst.msk [vmem:[%s196_s3 + $0x4] sm:$0xf] %vm118_vm3, %v132_v23 }

// kernel: gpt2_forward.24
= control target key start
LH: loop header
LB: loop body
LE: loop exit
PB: predicated region body
PF: predicated region fallthrough
CT: control target
= control target key end

     0   :  { %vm34_vm0 = vcmask 261120   ;;  %v379_v0 = vmov 0.0   ;;  %vm380_vm1 = vmmov 0   ;;  %v45_v12 = vlaneseq  ;;  %s495_s1 = inlined_call_operand.vmem [shape: bf16[32,128], index: 1, kind: input, shape index: {}]   ;;  %s496_s3 = inlined_call_operand.vmem [shape: bf16[128,32], index: 3, kind: input, shape index: {}]   ;;  %s497_s0 = inlined_call_operand.vmem [shape: bf16[16,32], index: 0, kind: input, shape index: {}, may-alias: {0,5}]   ;;  %s498_s2 = inlined_call_operand.vmem [shape: bf16[1,128], index: 2, kind: input, shape index: {}]   ;;  %s499_s4 = inlined_call_operand.vmem [shape: bf16[1,32], index: 4, kind: input, shape index: {}]   ;;  %s500_s5 = inlined_call_operand.vmem [shape: bf16[16,32], index: 5, kind: input, shape index: {}, may-alias: {0,5}]   ;;  %s501_s6 = inlined_call_operand.vmem [shape: bf16[1,32], index: 6, kind: input, shape index: {}]   ;;  %s502_s7 = inlined_call_operand.vmem [shape: bf16[1,32], index: 7, kind: input, shape index: {}]   ;;  %s503_s8 = inlined_call_operand.vmem [shape: bf16[16,32], index: 8, kind: output, shape index: {}]  }
   0x1   :  { %334 = vmatprep.subr.bf16.mxu0 %v379_v0  ;;  %v364_v1 = vld [vmem:[%s495_s1] sm:$0xff]   ;;  %338 = vmatprep.mubr.msk.bf16.mxu0 %vm380_vm1, %v379_v0  ;;  %35 = vst.msk [vmem:[#allocation2] sm:$0xff] %vm34_vm0, %v379_v0  ;;  %36 = vst.msk [vmem:[#allocation2 + $0x8] sm:$0xff] %vm34_vm0, %v379_v0  ;;  %v365_v2 = vld [vmem:[%s495_s1 + $0x8] sm:$0xff]   ;;  %vm295_vm2 = vcmask 257024  }
   0x2   :  { %342 = vmatprep.subr.bf16.mxu1 %v379_v0  ;;  %358 = vmatprep.mubr.msk.bf16.mxu1 %vm380_vm1, %v379_v0  ;;  %v367_v3 = vld [vmem:[%s496_s3] sm:$0xff]   ;;  %v368_v5 = vld [vmem:[%s496_s3 + $0x8] sm:$0xff]   ;;  %v369_v6 = vld [vmem:[%s496_s3 + $0x10] sm:$0xff]   ;;  %v46_v13 = vshrl.u32 %v45_v12, 7 }
   0x3   :  { %335 = vmatpush3.bf16.msra.mxu0 %v364_v1  ;;  %v366_v4 = vld [vmem:[%s497_s0] sm:$0xff]   ;;  %343 = vmatpush3.bf16.msra.mxu1 %v367_v3  ;;  %v370_v7 = vld [vmem:[%s496_s3 + $0x18] sm:$0xff]   ;;  %v372_v9 = vld [vmem:[%s496_s3 + $0x28] sm:$0xff]  }
   0x4   :  { %336 = vmatprep.subr.bf16.mxu0 %v379_v0  ;;  %344 = vmatprep.subr.bf16.mxu1 %v379_v0  ;;  %v371_v8 = vld [vmem:[%s496_s3 + $0x20] sm:$0xff]   ;;  %v373_v10 = vld [vmem:[%s496_s3 + $0x30] sm:$0xff]   ;;  %v374_v11 = vld [vmem:[%s496_s3 + $0x38] sm:$0xff]   ;;  %v465_v16 = vsub.s32 0, %v46_v13 }
   0x5   :  { %v43_v14 = vld [vmem:[%s498_s2] sm:$0x1] }
   0x6   :  { %v44_v15 = vunpack.c.l.bf16 %v43_v14  ;;  %v230_v30 = vld [vmem:[%s499_s4] sm:$0x1] }
   0x7   :  { %337 = vmatpush3.bf16.msra.mxu0 %v365_v2  ;;  %345 = vmatpush3.bf16.msra.mxu1 %v368_v5  ;;  %v231_v36 = vunpack.c.l.bf16 %v230_v30  ;;  %v319_v37 = vld [vmem:[%s500_s5] sm:$0xff]  }
   0x8   :  { %346 = vmatprep.subr.bf16.mxu1 %v379_v0  ;;  %v48_v17 = vrot.slane %v44_v15, %v465_v16  ;;  %v113_v27 = vld [vmem:[#allocation2] sm:$0xff]  ;;  %v114_v29 = vld [vmem:[#allocation2 + $0x8] sm:$0xff]  ;;  %v320_v39 = vunpack.c.l.bf16 %v319_v37  ;;  %v321_v42 = vunpack.c.h.bf16 %v319_v37 }
   0x9   :  { %v235_v38 = vrot.slane %v231_v36, %v465_v16  ;;  %v279_v2 = vld [vmem:[%s502_s7] sm:$0x1] }
   0xa   :  { %339 = vmatmul.mubr.msk.bf16.vlgmr.msra.gmra.mrb[0].mxu0 %vm34_vm0, %v366_v4  ;;  %v280_v4 = vunpack.c.l.bf16 %v279_v2 }
   0xb   :  { %347 = vmatpush3.bf16.msra.mxu1 %v369_v6 }
   0xc   :  { %348 = vmatprep.subr.bf16.mxu1 %v379_v0 }
   0xf   :  { %349 = vmatpush3.bf16.msra.mxu1 %v370_v7  ;;  %v284_v7 = vrot.slane %v280_v4, %v465_v16 }
  0x10   :  { %350 = vmatprep.subr.bf16.mxu1 %v379_v0 }
  0x13   :  { %351 = vmatpush3.bf16.msra.mxu1 %v371_v8 }
  0x14   :  { %352 = vmatprep.subr.bf16.mxu1 %v379_v0 }
  0x17   :  { %353 = vmatpush3.bf16.msra.mxu1 %v372_v9 }
  0x18   :  { %354 = vmatprep.subr.bf16.mxu1 %v379_v0 }
  0x1b   :  { %355 = vmatpush3.bf16.msra.mxu1 %v373_v10 }
  0x1c   :  { %356 = vmatprep.subr.bf16.mxu1 %v379_v0  ;;  %v271_v0 = vld [vmem:[%s501_s6] sm:$0x1] }
  0x1d   :  { %v272_v3 = vunpack.c.l.bf16 %v271_v0 }
  0x1f   :  { %357 = vmatpush3.bf16.msra.mxu1 %v374_v11  ;;  %v276_v5 = vrot.slane %v272_v3, %v465_v16 }
  0xdd   :  { %v104_v18 = vpop.f32.mrb[0].mxu0 }
  0xde   :  { %v105_v19 = vadd.f32 %v104_v18, %v48_v17  ;;  %v340_v20 = vpop.f32.mrb[1].mxu0 }
  0xdf   :  { %v107_v21 = vpop.f32.mrb[2].mxu0 }
  0xe0   :  { %v108_v22 = vadd.f32 %v107_v21, %v48_v17  ;;  %v341_v23 = vpop.f32.mrb[3].mxu0  ;;  %v111_v24 = vmax.f32 %v105_v19, 0.0 }
  0xe2   :  { %v112_v25 = vmax.f32 %v108_v22, 0.0 }
  0xe4   :  { %v115_v26 = vpack.c.bf16 %v112_v25, %v111_v24 }
  0xe6   :  { %359 = vmatmul.mubr.bf16.vlgmr.msra.gmra.mrb[0].mxu1 %v115_v26 }
 0x1b9   :  { %v214_v28 = vpop.f32.mrb[0].mxu1 }
 0x1ba   :  { %v221_v31 = vadd.f32 %v214_v28, %v113_v27  ;;  %v360_v32 = vpop.f32.mrb[1].mxu1 }
 0x1bb   :  { %v217_v33 = vpop.f32.mrb[2].mxu1 }
 0x1bc   :  { %223 = vst.msk [vmem:[#allocation2] sm:$0xff] %vm34_vm0, %v221_v31  ;;  %v222_v34 = vadd.f32 %v217_v33, %v114_v29  ;;  %v361_v35 = vpop.f32.mrb[3].mxu1 }
 0x1be   :  { %224 = vst.msk [vmem:[#allocation2 + $0x8] sm:$0xff] %vm34_vm0, %v222_v34 }
 0x1c3   :  { %v228_v40 = vld [vmem:[#allocation2] sm:$0xff] }
 0x1c4   :  { %v236_v41 = vadd.f32 %v235_v38, %v228_v40 }
 0x1c5   :  { %v229_v43 = vld [vmem:[#allocation2 + $0x8] sm:$0xff] }
 0x1c6   :  { %v242_v44 = vadd.f32 %v320_v39, %v236_v41  ;;  %v237_v45 = vadd.f32 %v235_v38, %v229_v43 }
 0x1c8   :  { %v244_v46 = vsel %vm34_vm0, %v242_v44, 0.0  ;;  %v243_v47 = vadd.f32 %v321_v42, %v237_v45 }
 0x1c9   :  { %245 = vadd.xlane.f32.xlu0 %v244_v46 }
 0x1ca   :  { %v247_v48 = vsel %vm34_vm0, %v243_v47, 0.0 }
 0x1cd   :  { %248 = vadd.xlane.f32.xlu0 %v247_v48 }
 0x256   :  { %v246_v49 = vpop.xlane.xlu0 %245 }
 0x257   :  { %v251_v50 = vmul.f32 0.03125, %v246_v49 }
 0x259   :  { %v253_v51 = vsub.f32 %v242_v44, %v251_v50 }
 0x25a   :  { %v249_v52 = vpop.xlane.xlu0 %248 }
 0x25b   :  { %v252_v53 = vmul.f32 0.03125, %v249_v52  ;;  %v255_v54 = vmul.f32 %v253_v51, %v253_v51 }
 0x25d   :  { %v254_v55 = vsub.f32 %v243_v47, %v252_v53  ;;  %v257_v56 = vsel %vm34_vm0, %v255_v54, 0.0 }
 0x25e   :  { %258 = vadd.xlane.f32.xlu1 %v257_v56 }
 0x25f   :  { %v256_v57 = vmul.f32 %v254_v55, %v254_v55 }
 0x261   :  { %v260_v58 = vsel %vm34_vm0, %v256_v57, 0.0 }
 0x262   :  { %261 = vadd.xlane.f32.xlu1 %v260_v58 }
 0x2eb   :  { %v259_v59 = vpop.xlane.xlu1 %258 }
 0x2ec   :  { %v263_v60 = vmul.f32 0.03125, %v259_v59 }
 0x2ee   :  { %v265_v61 = vadd.f32 1e-05, %v263_v60 }
 0x2ef   :  { %v262_v62 = vpop.xlane.xlu1 %261 }
 0x2f0   :  { %375 = vrsqrt.f32 %v265_v61  ;;  %v264_v63 = vmul.f32 0.03125, %v262_v62 }
 0x2f2   :  { %v266_v1 = vadd.f32 1e-05, %v264_v63 }
 0x2f4   :  { %377 = vrsqrt.f32 %v266_v1 }
 0x2fa   :  { %v376_v6 = vpop.eup %375 }
 0x2fb   :  { %v269_v8 = vmul.f32 %v376_v6, %v253_v51 }
 0x2fd   :  { %v277_v9 = vmul.f32 %v276_v5, %v269_v8 }
 0x2fe   :  { %v378_v10 = vpop.eup %377 }
 0x2ff   :  { %v285_v11 = vadd.f32 %v284_v7, %v277_v9  ;;  %v270_v12 = vmul.f32 %v378_v10, %v254_v55 }
 0x301   :  { %v316_v13 = vpack.c.bf16 %v285_v11, %v285_v11  ;;  %v278_v14 = vmul.f32 %v276_v5, %v270_v12 }
 0x303   :  { %296 = vst.msk [vmem:[%s503_s8] sm:$0xf] %vm295_vm2, %v316_v13  ;;  %v286_v15 = vadd.f32 %v284_v7, %v278_v14 }
 0x305   :  { %v317_v17 = vpack.c.bf16 %v286_v15, %v286_v15 }
 0x307   :  { %297 = vst.msk [vmem:[%s503_s8 + $0x4] sm:$0xf] %vm295_vm2, %v317_v17 }

</bundles_post_ra>
